<compile_context>
chip_gen: v7x
topology: tpu7x:2x2x1
jax: 0.10.0
libtpu: 0.0.40
codegen_flags: <defaults>
</compile_context>

<pallas_src>
import functools

import jax
import jax.numpy as jnp
from jax import lax
from jax.experimental import pallas as pl
from jax.experimental.pallas import tpu as pltpu

LANE = 128          # packed lane width for all activations / weight blocks
ONE_LANE = LANE - 1  # lane holding the constant 1.0 (bias feed-through)


# ---------------------------------------------------------------------------
# Pallas kernel: T MAVERIC forward steps, fused, with the embed feedback carry.
# ---------------------------------------------------------------------------
def maveric_kernel(x_ref, w_ref, out_ref, *, n_steps, off_e, E):
    """Fused multi-step MAVERIC forward.

    x_ref  : (T, 128)   per-step [f|l|v|embed(step0 only)|0|1.0] packed states
    w_ref  : (128, 640) [WA(256) | WB(256) | WC(128)] packed weights+biases
    out_ref: (T, 128)   lanes 0..3 = f/l/v/s preds, lanes off_e..off_e+E = mi_pred
    """
    dot = lambda a, b: jnp.dot(a, b, preferred_element_type=jnp.float32)

    lanes = lax.broadcasted_iota(jnp.int32, (1, LANE), 1)
    emb_mask = (lanes >= off_e) & (lanes < off_e + E)

    # Embed carry (mi_pred of previous step, sitting in the embed lanes).
    # Step 0's embed parameter is already packed into x row 0.
    emb = jnp.zeros((1, LANE), jnp.float32)

    for t in range(n_steps):  # static unroll; T is small and known at trace time
        x = x_ref[t:t + 1, :] + emb                       # (1, 128)

        # Dot 1: all four predictor fc1 layers + MI fc1 contribution from x
        # (fc1 biases & folded MI bias arrive via the 1.0 lane of x).
        tA = dot(x, w_ref[:, 0:2 * LANE])                 # (1, 256)
        h1 = jnp.maximum(tA[:, 0:LANE], 0.0)              # [h_f|ml|mv|h_s]

        # Dot 2: fc2 heads (no bias yet) + MI fc1 contribution from h1
        # (Wmi_p already folded into this block host-side).
        tB = dot(h1, w_ref[:, 2 * LANE:4 * LANE])         # (1, 256)

        # MI hidden state; its lane 127 is forced to 1.0 to deliver out biases.
        h_mi = jnp.maximum(tA[:, LANE:2 * LANE] + tB[:, LANE:2 * LANE], 0.0)

        # Dot 3: MI fc2 into the embed lanes + all output biases via the 1-lane.
        out = tB[:, 0:LANE] + dot(h_mi, w_ref[:, 4 * LANE:5 * LANE])
        out_ref[t:t + 1, :] = out

        # self.embed = mi_pred  (carried to the next step's input).
        emb = jnp.where(emb_mask, out, 0.0)


# ---------------------------------------------------------------------------
# Host-side packing (done once per parameter set; pure XLA ops)
# ---------------------------------------------------------------------------
def pack_weights(params, E, F, L, V, H, MI):
    (wfx, wfe, bf1, wf2, bf2,
     wlx, wle, bl1, wl2, bl2,
     wvx, wve, bv1, wv2, bv2,
     ws1, bs1, ws2, bs2,
     wmiml, wmimv, wmif, wmip, bmi1, wmi2, bmi2) = params

    K = LANE
    off_f, off_l, off_v, off_e = 0, F, F + L, F + L + V
    c_f, c_l, c_v, c_s = 0, H, 2 * H, 3 * H
    assert off_e + E <= K - 1, "need a spare lane (127) for the constant 1.0"
    assert 4 * H <= K
    assert MI <= K - 1, "need MI column 127 spare for the bias feed-through"
    assert off_e >= 4, "pred lanes 0..3 must not overlap the mi_pred lanes"

    z = lambda *s: jnp.zeros(s, jnp.float32)

    # --- WA: x -> [h1_pre (cols 0..127) | mi_pre from x (cols 128..255)] ------
    WA = z(K, 2 * K)
    WA = WA.at[off_f:off_f + F, c_f:c_f + H].set(wfx)
    WA = WA.at[off_e:off_e + E, c_f:c_f + H].set(wfe)
    WA = WA.at[off_l:off_l + L, c_l:c_l + H].set(wlx)
    WA = WA.at[off_e:off_e + E, c_l:c_l + H].set(wle)
    WA = WA.at[off_v:off_v + V, c_v:c_v + H].set(wvx)
    WA = WA.at[off_e:off_e + E, c_v:c_v + H].set(wve)
    WA = WA.at[off_e:off_e + E, c_s:c_s + H].set(ws1)
    # fc1 biases folded in via the constant-1.0 lane of x.
    WA = WA.at[ONE_LANE, c_f:c_f + H].set(bf1[0])
    WA = WA.at[ONE_LANE, c_l:c_l + H].set(bl1[0])
    WA = WA.at[ONE_LANE, c_v:c_v + H].set(bv1[0])
    WA = WA.at[ONE_LANE, c_s:c_s + H].set(bs1[0])
    # MI fc1 contribution from f_state.
    WA = WA.at[off_f:off_f + F, K:K + MI].set(wmif)
    # Folded MI fc1 bias:  bmi1' = bmi1 + [bf2 bl2 bv2 bs2] @ wmip  (Wmi_p fold).
    b2_vec = jnp.concatenate([bf2, bl2, bv2, bs2], axis=1)        # (1, 4)
    bmi1_f = bmi1 + b2_vec @ wmip                                  # (1, MI)
    WA = WA.at[ONE_LANE, K:K + MI].set(bmi1_f[0])
    # Constant-1.0 feed-through so that h_mi[lane 127] == 1.0 after the relu.
    WA = WA.at[ONE_LANE, K + ONE_LANE].set(1.0)

    # --- WB: h1 -> [preds w/o bias (cols 0..3) | mi_pre from h1 (folded)] -----
    W2 = z(K, 4)
    W2 = W2.at[c_f:c_f + H, 0].set(wf2[:, 0])
    W2 = W2.at[c_l:c_l + H, 1].set(wl2[:, 0])
    W2 = W2.at[c_v:c_v + H, 2].set(wv2[:, 0])
    W2 = W2.at[c_s:c_s + H, 3].set(ws2[:, 0])
    WB = z(K, 2 * K)
    WB = WB.at[:, 0:4].set(W2)
    Wmi_h = z(K, MI)
    Wmi_h = Wmi_h.at[c_l:c_l + H, :].set(wmiml)
    Wmi_h = Wmi_h.at[c_v:c_v + H, :].set(wmimv)
    # Wmi_h' = Wmi_h + W2 @ wmip   (algebraic fold of the preds->MI dot).
    WB = WB.at[:, K:K + MI].set(Wmi_h + W2 @ wmip)

    # --- WC: h_mi -> out (mi_pred at embed lanes; all output biases via 1-lane)
    WC = z(K, K)
    WC = WC.at[0:MI, off_e:off_e + E].set(wmi2)
    WC = WC.at[ONE_LANE, 0:4].set(b2_vec[0])          # fc2 scalar biases
    WC = WC.at[ONE_LANE, off_e:off_e + E].set(bmi2[0])  # MI fc2 bias

    return jnp.concatenate([WA, WB, WC], axis=1)       # (128, 640)


def pack_states(embed, f_states, l_states, v_states, E, F, L, V):
    T = f_states.shape[0]
    off_e = F + L + V
    x = jnp.zeros((T, LANE), jnp.float32)
    x = x.at[:, 0:F].set(f_states)
    x = x.at[:, F:F + L].set(l_states)
    x = x.at[:, F + L:F + L + V].set(v_states)
    x = x.at[0, off_e:off_e + E].set(embed[0])   # initial embed only at step 0
    x = x.at[:, ONE_LANE].set(1.0)               # constant bias lane
    return x


# ---------------------------------------------------------------------------
# Wrapper
# ---------------------------------------------------------------------------
def maveric_forward(w_slab, embed, f_states, l_states, v_states, E, F, L, V):
    off_e = F + L + V
    x = pack_states(embed, f_states, l_states, v_states, E, F, L, V)  # (T,128)
    T = x.shape[0]

    kernel = functools.partial(maveric_kernel, n_steps=T, off_e=off_e, E=E)
    vmem = pl.BlockSpec(memory_space=pltpu.MemorySpace.VMEM)
    flops = T * 2 * (LANE * 2 * LANE + LANE * 2 * LANE + LANE * LANE)
    nbytes = 4 * (x.size + w_slab.size + T * LANE)

    out = pl.pallas_call(
        kernel,
        out_shape=jax.ShapeDtypeStruct((T, LANE), jnp.float32),
        in_specs=[vmem, vmem],
        out_specs=vmem,
        cost_estimate=pl.CostEstimate(
            flops=flops, transcendentals=0, bytes_accessed=nbytes),
    )(x, w_slab)

    f_pred = out[:, 0:1]
    l_pred = out[:, 1:2]
    v_pred = out[:, 2:3]
    s_pred = out[:, 3:4]
    mi_pred = out[:, off_e:off_e + E]
    return f_pred, l_pred, v_pred, s_pred, mi_pred


# ---------------------------------------------------------------------------
# Pure-JAX reference (mirrors the torch semantics with explicit cat)
# ---------------------------------------------------------------------------
def maveric_reference(params, embed, f_state, l_state, v_state):
    (wfx, wfe, bf1, wf2, bf2,
     wlx, wle, bl1, wl2, bl2,
     wvx, wve, bv1, wv2, bv2,
     ws1, bs1, ws2, bs2,
     wmiml, wmimv, wmif, wmip, bmi1, wmi2, bmi2) = params

    relu = jax.nn.relu
    f_in = jnp.concatenate([f_state, embed], axis=1)
    h_f = relu(f_in @ jnp.concatenate([wfx, wfe], axis=0) + bf1)
    f_pred = h_f @ wf2 + bf2

    l_in = jnp.concatenate([l_state, embed], axis=1)
    ml = relu(l_in @ jnp.concatenate([wlx, wle], axis=0) + bl1)
    l_pred = ml @ wl2 + bl2

    v_in = jnp.concatenate([v_state, embed], axis=1)
    mv = relu(v_in @ jnp.concatenate([wvx, wve], axis=0) + bv1)
    v_pred = mv @ wv2 + bv2

    h_s = relu(embed @ ws1 + bs1)
    s_pred = h_s @ ws2 + bs2

    X = jnp.concatenate([ml, mv, f_state], axis=1)
    P = jnp.concatenate([f_pred, l_pred, v_pred, s_pred], axis=1)
    w1 = jnp.concatenate([wmiml, wmimv, wmif, wmip], axis=0)
    h_mi = relu(jnp.concatenate([X, P], axis=1) @ w1 + bmi1)
    mi_pred = h_mi @ wmi2 + bmi2
    return f_pred, l_pred, v_pred, s_pred, mi_pred


def maveric_reference_steps(params, embed0, f_states, l_states, v_states):
    """Iterated forward with the torch `self.embed = mi_pred` feedback."""
    T = f_states.shape[0]
    embed = embed0
    outs = []
    for t in range(T):
        step = maveric_reference(params, embed,
                                 f_states[t:t + 1], l_states[t:t + 1],
                                 v_states[t:t + 1])
        outs.append(step)
        embed = step[-1]            # self.embed = mi_pred
    return tuple(jnp.concatenate([o[i] for o in outs], axis=0) for i in range(5))


# ---------------------------------------------------------------------------
# Deterministic parameter construction
# ---------------------------------------------------------------------------
def init_params(key, E, F, L, V, H, MI):
    def nxt():
        nonlocal key
        key, sub = jax.random.split(key)
        return sub

    u = lambda shape, s=0.1: jax.random.uniform(
        nxt(), shape, jnp.float32, minval=-s, maxval=s)

    params = (
        # following distance
        u((F, H)), u((E, H)), u((1, H)), u((H, 1)), u((1, 1)),
        # lane change
        u((L, H)), u((E, H)), u((1, H)), u((H, 1)), u((1, 1)),
        # velocity
        u((V, H)), u((E, H)), u((1, H)), u((H, 1)), u((1, 1)),
        # style
        u((E, H)), u((1, H)), u((H, 1)), u((1, 1)),
        # mutual information (fc1 split into X segments + 4-wide P segment)
        u((H, MI)), u((H, MI)), u((F, MI)), u((4, MI)), u((1, MI)),
        u((MI, E)), u((1, E)),
    )
    return params


if __name__ == "__main__":
    # Small shapes consistent with the module (embed is a (1, embed_dim) param);
    # T independent forward steps with the embed <- mi_pred feedback carried
    # inside the single fused kernel launch.
    E, F, L, V = 32, 16, 12, 10
    H, MI = 32, 32
    T = 8

    key = jax.random.PRNGKey(0)
    key, ke, kf, kl, kv, kp = jax.random.split(key, 6)

    embed = jax.random.uniform(ke, (1, E), jnp.float32)   # nn.Parameter(torch.rand(1, E))
    f_states = jax.random.normal(kf, (T, F), jnp.float32)
    l_states = jax.random.normal(kl, (T, L), jnp.float32)
    v_states = jax.random.normal(kv, (T, V), jnp.float32)
    params = init_params(kp, E, F, L, V, H, MI)

    w_slab = pack_weights(params, E, F, L, V, H, MI)       # pack once (128, 640)

    outs = maveric_forward(w_slab, embed, f_states, l_states, v_states, E, F, L, V)
    outs = jax.block_until_ready(outs)

    refs = maveric_reference_steps(params, embed, f_states, l_states, v_states)
    for o, r in zip(outs, refs):
        assert o.shape == r.shape, (o.shape, r.shape)
        assert jnp.allclose(o, r, atol=1e-4, rtol=1e-4), (o, r)

    # TODO(synk): train1/train2/apply_to_you (SGD optimizers, backward, losses)
    # have no Pallas forward equivalent; the stateful `self.embed = mi_pred`
    # mutation is modeled as the per-step embed carry inside the kernel.
    print("KERNEL_OK")
</pallas_src>

<mosaic_0001>
module attributes {stable_mosaic.version = 11 : i64} {
  func.func @maveric_kernel(%arg0: memref<8x128xf32, #tpu.memory_space<vmem>>, %arg1: memref<128x640xf32, #tpu.memory_space<vmem>>, %arg2: memref<8x128xf32, #tpu.memory_space<vmem>>) attributes {dimension_semantics = [], scalar_prefetch = 0 : i64, scratch_operands = 0 : i64, tpu.core_type = #tpu.core_type<tc>} {
    %0 = tpu.iota {dimensions = array<i32: 1>} : vector<1x128xi32>
    %c38_i32 = arith.constant 38 : i32
    %1 = vector.broadcast %c38_i32 : i32 to vector<1x128xi32>
    %2 = arith.cmpi sge, %0, %1 : vector<1x128xi32>
    %c70_i32 = arith.constant 70 : i32
    %3 = vector.broadcast %c70_i32 : i32 to vector<1x128xi32>
    %4 = arith.cmpi slt, %0, %3 : vector<1x128xi32>
    %5 = arith.andi %2, %4 : vector<1x128xi1>
    %cst = arith.constant 0.000000e+00 : f32
    %6 = vector.broadcast %cst : f32 to vector<1x128xf32>
    %c0 = arith.constant 0 : index
    %c0_0 = arith.constant 0 : index
    %7 = vector.load %arg0[%c0, %c0_0] : memref<8x128xf32, #tpu.memory_space<vmem>>, vector<1x128xf32>
    %8 = arith.addf %7, %6 : vector<1x128xf32>
    %c0_1 = arith.constant 0 : index
    %c0_2 = arith.constant 0 : index
    %9 = vector.load %arg1[%c0_1, %c0_2] : memref<128x640xf32, #tpu.memory_space<vmem>>, vector<128x256xf32>
    %cst_3 = arith.constant dense<0.000000e+00> : vector<1x256xf32>
    %10 = tpu.matmul %8, %9, %cst_3 {dimension_numbers = #tpu.dot_dimension_numbers<[1], [0], [0], [1], [0, 0, 1, 1], [], []>} : vector<1x128xf32>, vector<128x256xf32>, vector<1x256xf32> -> vector<1x256xf32>
    %11 = vector.extract_strided_slice %10 {offsets = [0, 0], sizes = [1, 128], strides = [1, 1]} : vector<1x256xf32> to vector<1x128xf32>
    %cst_4 = arith.constant 0.000000e+00 : f32
    %12 = vector.broadcast %cst_4 : f32 to vector<1x128xf32>
    %13 = arith.maximumf %11, %12 : vector<1x128xf32>
    %c0_5 = arith.constant 0 : index
    %c256 = arith.constant 256 : index
    %14 = vector.load %arg1[%c0_5, %c256] : memref<128x640xf32, #tpu.memory_space<vmem>>, vector<128x256xf32>
    %cst_6 = arith.constant dense<0.000000e+00> : vector<1x256xf32>
    %15 = tpu.matmul %13, %14, %cst_6 {dimension_numbers = #tpu.dot_dimension_numbers<[1], [0], [0], [1], [0, 0, 1, 1], [], []>} : vector<1x128xf32>, vector<128x256xf32>, vector<1x256xf32> -> vector<1x256xf32>
    %16 = vector.extract_strided_slice %10 {offsets = [0, 128], sizes = [1, 128], strides = [1, 1]} : vector<1x256xf32> to vector<1x128xf32>
    %17 = vector.extract_strided_slice %15 {offsets = [0, 128], sizes = [1, 128], strides = [1, 1]} : vector<1x256xf32> to vector<1x128xf32>
    %18 = arith.addf %16, %17 : vector<1x128xf32>
    %cst_7 = arith.constant 0.000000e+00 : f32
    %19 = vector.broadcast %cst_7 : f32 to vector<1x128xf32>
    %20 = arith.maximumf %18, %19 : vector<1x128xf32>
    %21 = vector.extract_strided_slice %15 {offsets = [0, 0], sizes = [1, 128], strides = [1, 1]} : vector<1x256xf32> to vector<1x128xf32>
    %c0_8 = arith.constant 0 : index
    %c512 = arith.constant 512 : index
    %22 = vector.load %arg1[%c0_8, %c512] : memref<128x640xf32, #tpu.memory_space<vmem>>, vector<128x128xf32>
    %cst_9 = arith.constant dense<0.000000e+00> : vector<1x128xf32>
    %23 = tpu.matmul %20, %22, %cst_9 {dimension_numbers = #tpu.dot_dimension_numbers<[1], [0], [0], [1], [0, 0, 1, 1], [], []>} : vector<1x128xf32>, vector<128x128xf32>, vector<1x128xf32> -> vector<1x128xf32>
    %24 = arith.addf %21, %23 : vector<1x128xf32>
    %c0_10 = arith.constant 0 : index
    %c0_11 = arith.constant 0 : index
    %25 = vector.load %arg2[%c0_10, %c0_11] : memref<8x128xf32, #tpu.memory_space<vmem>>, vector<1x128xf32>
    tpu.vector_store %arg2[%c0_10, %c0_11], %24 {strides = array<i32>} : memref<8x128xf32, #tpu.memory_space<vmem>>, vector<1x128xf32>,
    %cst_12 = arith.constant 0.000000e+00 : f32
    %26 = vector.broadcast %cst_12 : f32 to vector<1x128xf32>
    %27 = arith.select %5, %24, %26 : vector<1x128xi1>, vector<1x128xf32>
    %c1 = arith.constant 1 : index
    %c0_13 = arith.constant 0 : index
    %28 = vector.load %arg0[%c1, %c0_13] : memref<8x128xf32, #tpu.memory_space<vmem>>, vector<1x128xf32>
    %29 = arith.addf %28, %27 : vector<1x128xf32>
    %c0_14 = arith.constant 0 : index
    %c0_15 = arith.constant 0 : index
    %30 = vector.load %arg1[%c0_14, %c0_15] : memref<128x640xf32, #tpu.memory_space<vmem>>, vector<128x256xf32>
    %cst_16 = arith.constant dense<0.000000e+00> : vector<1x256xf32>
    %31 = tpu.matmul %29, %30, %cst_16 {dimension_numbers = #tpu.dot_dimension_numbers<[1], [0], [0], [1], [0, 0, 1, 1], [], []>} : vector<1x128xf32>, vector<128x256xf32>, vector<1x256xf32> -> vector<1x256xf32>
    %32 = vector.extract_strided_slice %31 {offsets = [0, 0], sizes = [1, 128], strides = [1, 1]} : vector<1x256xf32> to vector<1x128xf32>
    %cst_17 = arith.constant 0.000000e+00 : f32
    %33 = vector.broadcast %cst_17 : f32 to vector<1x128xf32>
    %34 = arith.maximumf %32, %33 : vector<1x128xf32>
    %c0_18 = arith.constant 0 : index
    %c256_19 = arith.constant 256 : index
    %35 = vector.load %arg1[%c0_18, %c256_19] : memref<128x640xf32, #tpu.memory_space<vmem>>, vector<128x256xf32>
    %cst_20 = arith.constant dense<0.000000e+00> : vector<1x256xf32>
    %36 = tpu.matmul %34, %35, %cst_20 {dimension_numbers = #tpu.dot_dimension_numbers<[1], [0], [0], [1], [0, 0, 1, 1], [], []>} : vector<1x128xf32>, vector<128x256xf32>, vector<1x256xf32> -> vector<1x256xf32>
    %37 = vector.extract_strided_slice %31 {offsets = [0, 128], sizes = [1, 128], strides = [1, 1]} : vector<1x256xf32> to vector<1x128xf32>
    %38 = vector.extract_strided_slice %36 {offsets = [0, 128], sizes = [1, 128], strides = [1, 1]} : vector<1x256xf32> to vector<1x128xf32>
    %39 = arith.addf %37, %38 : vector<1x128xf32>
    %cst_21 = arith.constant 0.000000e+00 : f32
    %40 = vector.broadcast %cst_21 : f32 to vector<1x128xf32>
    %41 = arith.maximumf %39, %40 : vector<1x128xf32>
    %42 = vector.extract_strided_slice %36 {offsets = [0, 0], sizes = [1, 128], strides = [1, 1]} : vector<1x256xf32> to vector<1x128xf32>
    %c0_22 = arith.constant 0 : index
    %c512_23 = arith.constant 512 : index
    %43 = vector.load %arg1[%c0_22, %c512_23] : memref<128x640xf32, #tpu.memory_space<vmem>>, vector<128x128xf32>
    %cst_24 = arith.constant dense<0.000000e+00> : vector<1x128xf32>
    %44 = tpu.matmul %41, %43, %cst_24 {dimension_numbers = #tpu.dot_dimension_numbers<[1], [0], [0], [1], [0, 0, 1, 1], [], []>} : vector<1x128xf32>, vector<128x128xf32>, vector<1x128xf32> -> vector<1x128xf32>
    %45 = arith.addf %42, %44 : vector<1x128xf32>
    %c1_25 = arith.constant 1 : index
    %c0_26 = arith.constant 0 : index
    %46 = vector.load %arg2[%c1_25, %c0_26] : memref<8x128xf32, #tpu.memory_space<vmem>>, vector<1x128xf32>
    tpu.vector_store %arg2[%c1_25, %c0_26], %45 {strides = array<i32>} : memref<8x128xf32, #tpu.memory_space<vmem>>, vector<1x128xf32>,
    %cst_27 = arith.constant 0.000000e+00 : f32
    %47 = vector.broadcast %cst_27 : f32 to vector<1x128xf32>
    %48 = arith.select %5, %45, %47 : vector<1x128xi1>, vector<1x128xf32>
    %c2 = arith.constant 2 : index
    %c0_28 = arith.constant 0 : index
    %49 = vector.load %arg0[%c2, %c0_28] : memref<8x128xf32, #tpu.memory_space<vmem>>, vector<1x128xf32>
    %50 = arith.addf %49, %48 : vector<1x128xf32>
    %c0_29 = arith.constant 0 : index
    %c0_30 = arith.constant 0 : index
    %51 = vector.load %arg1[%c0_29, %c0_30] : memref<128x640xf32, #tpu.memory_space<vmem>>, vector<128x256xf32>
    %cst_31 = arith.constant dense<0.000000e+00> : vector<1x256xf32>
    %52 = tpu.matmul %50, %51, %cst_31 {dimension_numbers = #tpu.dot_dimension_numbers<[1], [0], [0], [1], [0, 0, 1, 1], [], []>} : vector<1x128xf32>, vector<128x256xf32>, vector<1x256xf32> -> vector<1x256xf32>
    %53 = vector.extract_strided_slice %52 {offsets = [0, 0], sizes = [1, 128], strides = [1, 1]} : vector<1x256xf32> to vector<1x128xf32>
    %cst_32 = arith.constant 0.000000e+00 : f32
    %54 = vector.broadcast %cst_32 : f32 to vector<1x128xf32>
    %55 = arith.maximumf %53, %54 : vector<1x128xf32>
    %c0_33 = arith.constant 0 : index
    %c256_34 = arith.constant 256 : index
    %56 = vector.load %arg1[%c0_33, %c256_34] : memref<128x640xf32, #tpu.memory_space<vmem>>, vector<128x256xf32>
    %cst_35 = arith.constant dense<0.000000e+00> : vector<1x256xf32>
    %57 = tpu.matmul %55, %56, %cst_35 {dimension_numbers = #tpu.dot_dimension_numbers<[1], [0], [0], [1], [0, 0, 1, 1], [], []>} : vector<1x128xf32>, vector<128x256xf32>, vector<1x256xf32> -> vector<1x256xf32>
    %58 = vector.extract_strided_slice %52 {offsets = [0, 128], sizes = [1, 128], strides = [1, 1]} : vector<1x256xf32> to vector<1x128xf32>
    %59 = vector.extract_strided_slice %57 {offsets = [0, 128], sizes = [1, 128], strides = [1, 1]} : vector<1x256xf32> to vector<1x128xf32>
    %60 = arith.addf %58, %59 : vector<1x128xf32>
    %cst_36 = arith.constant 0.000000e+00 : f32
    %61 = vector.broadcast %cst_36 : f32 to vector<1x128xf32>
    %62 = arith.maximumf %60, %61 : vector<1x128xf32>
    %63 = vector.extract_strided_slice %57 {offsets = [0, 0], sizes = [1, 128], strides = [1, 1]} : vector<1x256xf32> to vector<1x128xf32>
    %c0_37 = arith.constant 0 : index
    %c512_38 = arith.constant 512 : index
    %64 = vector.load %arg1[%c0_37, %c512_38] : memref<128x640xf32, #tpu.memory_space<vmem>>, vector<128x128xf32>
    %cst_39 = arith.constant dense<0.000000e+00> : vector<1x128xf32>
    %65 = tpu.matmul %62, %64, %cst_39 {dimension_numbers = #tpu.dot_dimension_numbers<[1], [0], [0], [1], [0, 0, 1, 1], [], []>} : vector<1x128xf32>, vector<128x128xf32>, vector<1x128xf32> -> vector<1x128xf32>
    %66 = arith.addf %63, %65 : vector<1x128xf32>
    %c2_40 = arith.constant 2 : index
    %c0_41 = arith.constant 0 : index
    %67 = vector.load %arg2[%c2_40, %c0_41] : memref<8x128xf32, #tpu.memory_space<vmem>>, vector<1x128xf32>
    tpu.vector_store %arg2[%c2_40, %c0_41], %66 {strides = array<i32>} : memref<8x128xf32, #tpu.memory_space<vmem>>, vector<1x128xf32>,
    %cst_42 = arith.constant 0.000000e+00 : f32
    %68 = vector.broadcast %cst_42 : f32 to vector<1x128xf32>
    %69 = arith.select %5, %66, %68 : vector<1x128xi1>, vector<1x128xf32>
    %c3 = arith.constant 3 : index
    %c0_43 = arith.constant 0 : index
    %70 = vector.load %arg0[%c3, %c0_43] : memref<8x128xf32, #tpu.memory_space<vmem>>, vector<1x128xf32>
    %71 = arith.addf %70, %69 : vector<1x128xf32>
    %c0_44 = arith.constant 0 : index
    %c0_45 = arith.constant 0 : index
    %72 = vector.load %arg1[%c0_44, %c0_45] : memref<128x640xf32, #tpu.memory_space<vmem>>, vector<128x256xf32>
    %cst_46 = arith.constant dense<0.000000e+00> : vector<1x256xf32>
    %73 = tpu.matmul %71, %72, %cst_46 {dimension_numbers = #tpu.dot_dimension_numbers<[1], [0], [0], [1], [0, 0, 1, 1], [], []>} : vector<1x128xf32>, vector<128x256xf32>, vector<1x256xf32> -> vector<1x256xf32>
    %74 = vector.extract_strided_slice %73 {offsets = [0, 0], sizes = [1, 128], strides = [1, 1]} : vector<1x256xf32> to vector<1x128xf32>
    %cst_47 = arith.constant 0.000000e+00 : f32
    %75 = vector.broadcast %cst_47 : f32 to vector<1x128xf32>
    %76 = arith.maximumf %74, %75 : vector<1x128xf32>
    %c0_48 = arith.constant 0 : index
    %c256_49 = arith.constant 256 : index
    %77 = vector.load %arg1[%c0_48, %c256_49] : memref<128x640xf32, #tpu.memory_space<vmem>>, vector<128x256xf32>
    %cst_50 = arith.constant dense<0.000000e+00> : vector<1x256xf32>
    %78 = tpu.matmul %76, %77, %cst_50 {dimension_numbers = #tpu.dot_dimension_numbers<[1], [0], [0], [1], [0, 0, 1, 1], [], []>} : vector<1x128xf32>, vector<128x256xf32>, vector<1x256xf32> -> vector<1x256xf32>
    %79 = vector.extract_strided_slice %73 {offsets = [0, 128], sizes = [1, 128], strides = [1, 1]} : vector<1x256xf32> to vector<1x128xf32>
    %80 = vector.extract_strided_slice %78 {offsets = [0, 128], sizes = [1, 128], strides = [1, 1]} : vector<1x256xf32> to vector<1x128xf32>
    %81 = arith.addf %79, %80 : vector<1x128xf32>
    %cst_51 = arith.constant 0.000000e+00 : f32
    %82 = vector.broadcast %cst_51 : f32 to vector<1x128xf32>
    %83 = arith.maximumf %81, %82 : vector<1x128xf32>
    %84 = vector.extract_strided_slice %78 {offsets = [0, 0], sizes = [1, 128], strides = [1, 1]} : vector<1x256xf32> to vector<1x128xf32>
    %c0_52 = arith.constant 0 : index
    %c512_53 = arith.constant 512 : index
    %85 = vector.load %arg1[%c0_52, %c512_53] : memref<128x640xf32, #tpu.memory_space<vmem>>, vector<128x128xf32>
    %cst_54 = arith.constant dense<0.000000e+00> : vector<1x128xf32>
    %86 = tpu.matmul %83, %85, %cst_54 {dimension_numbers = #tpu.dot_dimension_numbers<[1], [0], [0], [1], [0, 0, 1, 1], [], []>} : vector<1x128xf32>, vector<128x128xf32>, vector<1x128xf32> -> vector<1x128xf32>
    %87 = arith.addf %84, %86 : vector<1x128xf32>
    %c3_55 = arith.constant 3 : index
    %c0_56 = arith.constant 0 : index
    %88 = vector.load %arg2[%c3_55, %c0_56] : memref<8x128xf32, #tpu.memory_space<vmem>>, vector<1x128xf32>
    tpu.vector_store %arg2[%c3_55, %c0_56], %87 {strides = array<i32>} : memref<8x128xf32, #tpu.memory_space<vmem>>, vector<1x128xf32>,
    %cst_57 = arith.constant 0.000000e+00 : f32
    %89 = vector.broadcast %cst_57 : f32 to vector<1x128xf32>
    %90 = arith.select %5, %87, %89 : vector<1x128xi1>, vector<1x128xf32>
    %c4 = arith.constant 4 : index
    %c0_58 = arith.constant 0 : index
    %91 = vector.load %arg0[%c4, %c0_58] : memref<8x128xf32, #tpu.memory_space<vmem>>, vector<1x128xf32>
    %92 = arith.addf %91, %90 : vector<1x128xf32>
    %c0_59 = arith.constant 0 : index
    %c0_60 = arith.constant 0 : index
    %93 = vector.load %arg1[%c0_59, %c0_60] : memref<128x640xf32, #tpu.memory_space<vmem>>, vector<128x256xf32>
    %cst_61 = arith.constant dense<0.000000e+00> : vector<1x256xf32>
    %94 = tpu.matmul %92, %93, %cst_61 {dimension_numbers = #tpu.dot_dimension_numbers<[1], [0], [0], [1], [0, 0, 1, 1], [], []>} : vector<1x128xf32>, vector<128x256xf32>, vector<1x256xf32> -> vector<1x256xf32>
    %95 = vector.extract_strided_slice %94 {offsets = [0, 0], sizes = [1, 128], strides = [1, 1]} : vector<1x256xf32> to vector<1x128xf32>
    %cst_62 = arith.constant 0.000000e+00 : f32
    %96 = vector.broadcast %cst_62 : f32 to vector<1x128xf32>
    %97 = arith.maximumf %95, %96 : vector<1x128xf32>
    %c0_63 = arith.constant 0 : index
    %c256_64 = arith.constant 256 : index
    %98 = vector.load %arg1[%c0_63, %c256_64] : memref<128x640xf32, #tpu.memory_space<vmem>>, vector<128x256xf32>
    %cst_65 = arith.constant dense<0.000000e+00> : vector<1x256xf32>
    %99 = tpu.matmul %97, %98, %cst_65 {dimension_numbers = #tpu.dot_dimension_numbers<[1], [0], [0], [1], [0, 0, 1, 1], [], []>} : vector<1x128xf32>, vector<128x256xf32>, vector<1x256xf32> -> vector<1x256xf32>
    %100 = vector.extract_strided_slice %94 {offsets = [0, 128], sizes = [1, 128], strides = [1, 1]} : vector<1x256xf32> to vector<1x128xf32>
    %101 = vector.extract_strided_slice %99 {offsets = [0, 128], sizes = [1, 128], strides = [1, 1]} : vector<1x256xf32> to vector<1x128xf32>
    %102 = arith.addf %100, %101 : vector<1x128xf32>
    %cst_66 = arith.constant 0.000000e+00 : f32
    %103 = vector.broadcast %cst_66 : f32 to vector<1x128xf32>
    %104 = arith.maximumf %102, %103 : vector<1x128xf32>
    %105 = vector.extract_strided_slice %99 {offsets = [0, 0], sizes = [1, 128], strides = [1, 1]} : vector<1x256xf32> to vector<1x128xf32>
    %c0_67 = arith.constant 0 : index
    %c512_68 = arith.constant 512 : index
    %106 = vector.load %arg1[%c0_67, %c512_68] : memref<128x640xf32, #tpu.memory_space<vmem>>, vector<128x128xf32>
    %cst_69 = arith.constant dense<0.000000e+00> : vector<1x128xf32>
    %107 = tpu.matmul %104, %106, %cst_69 {dimension_numbers = #tpu.dot_dimension_numbers<[1], [0], [0], [1], [0, 0, 1, 1], [], []>} : vector<1x128xf32>, vector<128x128xf32>, vector<1x128xf32> -> vector<1x128xf32>
    %108 = arith.addf %105, %107 : vector<1x128xf32>
    %c4_70 = arith.constant 4 : index
    %c0_71 = arith.constant 0 : index
    %109 = vector.load %arg2[%c4_70, %c0_71] : memref<8x128xf32, #tpu.memory_space<vmem>>, vector<1x128xf32>
    tpu.vector_store %arg2[%c4_70, %c0_71], %108 {strides = array<i32>} : memref<8x128xf32, #tpu.memory_space<vmem>>, vector<1x128xf32>,
    %cst_72 = arith.constant 0.000000e+00 : f32
    %110 = vector.broadcast %cst_72 : f32 to vector<1x128xf32>
    %111 = arith.select %5, %108, %110 : vector<1x128xi1>, vector<1x128xf32>
    %c5 = arith.constant 5 : index
    %c0_73 = arith.constant 0 : index
    %112 = vector.load %arg0[%c5, %c0_73] : memref<8x128xf32, #tpu.memory_space<vmem>>, vector<1x128xf32>
    %113 = arith.addf %112, %111 : vector<1x128xf32>
    %c0_74 = arith.constant 0 : index
    %c0_75 = arith.constant 0 : index
    %114 = vector.load %arg1[%c0_74, %c0_75] : memref<128x640xf32, #tpu.memory_space<vmem>>, vector<128x256xf32>
    %cst_76 = arith.constant dense<0.000000e+00> : vector<1x256xf32>
    %115 = tpu.matmul %113, %114, %cst_76 {dimension_numbers = #tpu.dot_dimension_numbers<[1], [0], [0], [1], [0, 0, 1, 1], [], []>} : vector<1x128xf32>, vector<128x256xf32>, vector<1x256xf32> -> vector<1x256xf32>
    %116 = vector.extract_strided_slice %115 {offsets = [0, 0], sizes = [1, 128], strides = [1, 1]} : vector<1x256xf32> to vector<1x128xf32>
    %cst_77 = arith.constant 0.000000e+00 : f32
    %117 = vector.broadcast %cst_77 : f32 to vector<1x128xf32>
    %118 = arith.maximumf %116, %117 : vector<1x128xf32>
    %c0_78 = arith.constant 0 : index
    %c256_79 = arith.constant 256 : index
    %119 = vector.load %arg1[%c0_78, %c256_79] : memref<128x640xf32, #tpu.memory_space<vmem>>, vector<128x256xf32>
    %cst_80 = arith.constant dense<0.000000e+00> : vector<1x256xf32>
    %120 = tpu.matmul %118, %119, %cst_80 {dimension_numbers = #tpu.dot_dimension_numbers<[1], [0], [0], [1], [0, 0, 1, 1], [], []>} : vector<1x128xf32>, vector<128x256xf32>, vector<1x256xf32> -> vector<1x256xf32>
    %121 = vector.extract_strided_slice %115 {offsets = [0, 128], sizes = [1, 128], strides = [1, 1]} : vector<1x256xf32> to vector<1x128xf32>
    %122 = vector.extract_strided_slice %120 {offsets = [0, 128], sizes = [1, 128], strides = [1, 1]} : vector<1x256xf32> to vector<1x128xf32>
    %123 = arith.addf %121, %122 : vector<1x128xf32>
    %cst_81 = arith.constant 0.000000e+00 : f32
    %124 = vector.broadcast %cst_81 : f32 to vector<1x128xf32>
    %125 = arith.maximumf %123, %124 : vector<1x128xf32>
    %126 = vector.extract_strided_slice %120 {offsets = [0, 0], sizes = [1, 128], strides = [1, 1]} : vector<1x256xf32> to vector<1x128xf32>
    %c0_82 = arith.constant 0 : index
    %c512_83 = arith.constant 512 : index
    %127 = vector.load %arg1[%c0_82, %c512_83] : memref<128x640xf32, #tpu.memory_space<vmem>>, vector<128x128xf32>
    %cst_84 = arith.constant dense<0.000000e+00> : vector<1x128xf32>
    %128 = tpu.matmul %125, %127, %cst_84 {dimension_numbers = #tpu.dot_dimension_numbers<[1], [0], [0], [1], [0, 0, 1, 1], [], []>} : vector<1x128xf32>, vector<128x128xf32>, vector<1x128xf32> -> vector<1x128xf32>
    %129 = arith.addf %126, %128 : vector<1x128xf32>
    %c5_85 = arith.constant 5 : index
    %c0_86 = arith.constant 0 : index
    %130 = vector.load %arg2[%c5_85, %c0_86] : memref<8x128xf32, #tpu.memory_space<vmem>>, vector<1x128xf32>
    tpu.vector_store %arg2[%c5_85, %c0_86], %129 {strides = array<i32>} : memref<8x128xf32, #tpu.memory_space<vmem>>, vector<1x128xf32>,
    %cst_87 = arith.constant 0.000000e+00 : f32
    %131 = vector.broadcast %cst_87 : f32 to vector<1x128xf32>
    %132 = arith.select %5, %129, %131 : vector<1x128xi1>, vector<1x128xf32>
    %c6 = arith.constant 6 : index
    %c0_88 = arith.constant 0 : index
    %133 = vector.load %arg0[%c6, %c0_88] : memref<8x128xf32, #tpu.memory_space<vmem>>, vector<1x128xf32>
    %134 = arith.addf %133, %132 : vector<1x128xf32>
    %c0_89 = arith.constant 0 : index
    %c0_90 = arith.constant 0 : index
    %135 = vector.load %arg1[%c0_89, %c0_90] : memref<128x640xf32, #tpu.memory_space<vmem>>, vector<128x256xf32>
    %cst_91 = arith.constant dense<0.000000e+00> : vector<1x256xf32>
    %136 = tpu.matmul %134, %135, %cst_91 {dimension_numbers = #tpu.dot_dimension_numbers<[1], [0], [0], [1], [0, 0, 1, 1], [], []>} : vector<1x128xf32>, vector<128x256xf32>, vector<1x256xf32> -> vector<1x256xf32>
    %137 = vector.extract_strided_slice %136 {offsets = [0, 0], sizes = [1, 128], strides = [1, 1]} : vector<1x256xf32> to vector<1x128xf32>
    %cst_92 = arith.constant 0.000000e+00 : f32
    %138 = vector.broadcast %cst_92 : f32 to vector<1x128xf32>
    %139 = arith.maximumf %137, %138 : vector<1x128xf32>
    %c0_93 = arith.constant 0 : index
    %c256_94 = arith.constant 256 : index
    %140 = vector.load %arg1[%c0_93, %c256_94] : memref<128x640xf32, #tpu.memory_space<vmem>>, vector<128x256xf32>
    %cst_95 = arith.constant dense<0.000000e+00> : vector<1x256xf32>
    %141 = tpu.matmul %139, %140, %cst_95 {dimension_numbers = #tpu.dot_dimension_numbers<[1], [0], [0], [1], [0, 0, 1, 1], [], []>} : vector<1x128xf32>, vector<128x256xf32>, vector<1x256xf32> -> vector<1x256xf32>
    %142 = vector.extract_strided_slice %136 {offsets = [0, 128], sizes = [1, 128], strides = [1, 1]} : vector<1x256xf32> to vector<1x128xf32>
    %143 = vector.extract_strided_slice %141 {offsets = [0, 128], sizes = [1, 128], strides = [1, 1]} : vector<1x256xf32> to vector<1x128xf32>
    %144 = arith.addf %142, %143 : vector<1x128xf32>
    %cst_96 = arith.constant 0.000000e+00 : f32
    %145 = vector.broadcast %cst_96 : f32 to vector<1x128xf32>
    %146 = arith.maximumf %144, %145 : vector<1x128xf32>
    %147 = vector.extract_strided_slice %141 {offsets = [0, 0], sizes = [1, 128], strides = [1, 1]} : vector<1x256xf32> to vector<1x128xf32>
    %c0_97 = arith.constant 0 : index
    %c512_98 = arith.constant 512 : index
    %148 = vector.load %arg1[%c0_97, %c512_98] : memref<128x640xf32, #tpu.memory_space<vmem>>, vector<128x128xf32>
    %cst_99 = arith.constant dense<0.000000e+00> : vector<1x128xf32>
    %149 = tpu.matmul %146, %148, %cst_99 {dimension_numbers = #tpu.dot_dimension_numbers<[1], [0], [0], [1], [0, 0, 1, 1], [], []>} : vector<1x128xf32>, vector<128x128xf32>, vector<1x128xf32> -> vector<1x128xf32>
    %150 = arith.addf %147, %149 : vector<1x128xf32>
    %c6_100 = arith.constant 6 : index
    %c0_101 = arith.constant 0 : index
    %151 = vector.load %arg2[%c6_100, %c0_101] : memref<8x128xf32, #tpu.memory_space<vmem>>, vector<1x128xf32>
    tpu.vector_store %arg2[%c6_100, %c0_101], %150 {strides = array<i32>} : memref<8x128xf32, #tpu.memory_space<vmem>>, vector<1x128xf32>,
    %cst_102 = arith.constant 0.000000e+00 : f32
    %152 = vector.broadcast %cst_102 : f32 to vector<1x128xf32>
    %153 = arith.select %5, %150, %152 : vector<1x128xi1>, vector<1x128xf32>
    %c7 = arith.constant 7 : index
    %c0_103 = arith.constant 0 : index
    %154 = vector.load %arg0[%c7, %c0_103] : memref<8x128xf32, #tpu.memory_space<vmem>>, vector<1x128xf32>
    %155 = arith.addf %154, %153 : vector<1x128xf32>
    %c0_104 = arith.constant 0 : index
    %c0_105 = arith.constant 0 : index
    %156 = vector.load %arg1[%c0_104, %c0_105] : memref<128x640xf32, #tpu.memory_space<vmem>>, vector<128x256xf32>
    %cst_106 = arith.constant dense<0.000000e+00> : vector<1x256xf32>
    %157 = tpu.matmul %155, %156, %cst_106 {dimension_numbers = #tpu.dot_dimension_numbers<[1], [0], [0], [1], [0, 0, 1, 1], [], []>} : vector<1x128xf32>, vector<128x256xf32>, vector<1x256xf32> -> vector<1x256xf32>
    %158 = vector.extract_strided_slice %157 {offsets = [0, 0], sizes = [1, 128], strides = [1, 1]} : vector<1x256xf32> to vector<1x128xf32>
    %cst_107 = arith.constant 0.000000e+00 : f32
    %159 = vector.broadcast %cst_107 : f32 to vector<1x128xf32>
    %160 = arith.maximumf %158, %159 : vector<1x128xf32>
    %c0_108 = arith.constant 0 : index
    %c256_109 = arith.constant 256 : index
    %161 = vector.load %arg1[%c0_108, %c256_109] : memref<128x640xf32, #tpu.memory_space<vmem>>, vector<128x256xf32>
    %cst_110 = arith.constant dense<0.000000e+00> : vector<1x256xf32>
    %162 = tpu.matmul %160, %161, %cst_110 {dimension_numbers = #tpu.dot_dimension_numbers<[1], [0], [0], [1], [0, 0, 1, 1], [], []>} : vector<1x128xf32>, vector<128x256xf32>, vector<1x256xf32> -> vector<1x256xf32>
    %163 = vector.extract_strided_slice %157 {offsets = [0, 128], sizes = [1, 128], strides = [1, 1]} : vector<1x256xf32> to vector<1x128xf32>
    %164 = vector.extract_strided_slice %162 {offsets = [0, 128], sizes = [1, 128], strides = [1, 1]} : vector<1x256xf32> to vector<1x128xf32>
    %165 = arith.addf %163, %164 : vector<1x128xf32>
    %cst_111 = arith.constant 0.000000e+00 : f32
    %166 = vector.broadcast %cst_111 : f32 to vector<1x128xf32>
    %167 = arith.maximumf %165, %166 : vector<1x128xf32>
    %168 = vector.extract_strided_slice %162 {offsets = [0, 0], sizes = [1, 128], strides = [1, 1]} : vector<1x256xf32> to vector<1x128xf32>
    %c0_112 = arith.constant 0 : index
    %c512_113 = arith.constant 512 : index
    %169 = vector.load %arg1[%c0_112, %c512_113] : memref<128x640xf32, #tpu.memory_space<vmem>>, vector<128x128xf32>
    %cst_114 = arith.constant dense<0.000000e+00> : vector<1x128xf32>
    %170 = tpu.matmul %167, %169, %cst_114 {dimension_numbers = #tpu.dot_dimension_numbers<[1], [0], [0], [1], [0, 0, 1, 1], [], []>} : vector<1x128xf32>, vector<128x128xf32>, vector<1x128xf32> -> vector<1x128xf32>
    %171 = arith.addf %168, %170 : vector<1x128xf32>
    %c7_115 = arith.constant 7 : index
    %c0_116 = arith.constant 0 : index
    %172 = vector.load %arg2[%c7_115, %c0_116] : memref<8x128xf32, #tpu.memory_space<vmem>>, vector<1x128xf32>
    tpu.vector_store %arg2[%c7_115, %c0_116], %171 {strides = array<i32>} : memref<8x128xf32, #tpu.memory_space<vmem>>, vector<1x128xf32>,
    return
  }
}

</mosaic_0001>

<bundles_post_ra>
// kernel: tpu_custom_call.1
= control target key start
LH: loop header
LB: loop body
LE: loop exit
PB: predicated region body
PF: predicated region fallthrough
CT: control target
= control target key end

     0   :  { %7 = vsyncpa [#allocation3], 0  ;;  %s4400_s0 = inlined_call_operand.hbm [shape: f32[8,128], index: 0, kind: input, shape index: {}]   ;;  %s4401_s1 = inlined_call_operand.hbm [shape: f32[128,640], index: 1, kind: input, shape index: {}]   ;;  %s4402_s2 = inlined_call_operand.hbm [shape: f32[8,128], index: 2, kind: output, shape index: {}]  }
   0x1   :  { %8 = vsyncpa [#allocation6], 0 }
   0x2   :  { %9 = vsyncpa [#allocation4], 0  ;;  %s3658_s9 = smov [#allocation2]   ;;  %s3659_s11 = smov [#allocation5]  }
   0x3   :  { %s16_s10 = sshll.u32 %s3658_s9, 4  ;;  %s25_s12 = sshll.u32 %s3659_s11, 4  ;;  %s17_s10 = int_to_ptr.vmem [resolvable:$true] %s16_s10  ;;  %s3681_s12 = int_to_ptr.vmem [resolvable:$true] %s25_s12 }
   0x4   :  { %s3586_s15 = scalar_lea.hbm %s4400_s0, 128 }
   0x5   :  { %p3587_p0 = scmp.ne.s32.totalorder %s4400_s0, %s3586_s15  ;;  %p3590_p1 = scmp.lt.u32.totalorder %s3586_s15, %s4400_s0 }
   0x7   :  { %p3592_p2 = pnand %p3590_p1, %p3587_p0 }
   0x9   :  { %3595 = shalt.err (!%p3592_p2)
}
   0xa   :  { %s3596_s20 = scalar_lea.vmem %s17_s10, 128  ;;  %p3601_p4 = scmp.lt.s32.totalorder %s17_s10, %s17_s10 }
   0xb   :  { %p3597_p3 = scmp.ne.s32.totalorder %s17_s10, %s3596_s20  ;;  %p3602_p5 = scmp.lt.s32.totalorder %s3596_s20, %s3596_s20 }
   0xd   :  { %p3603_p6 = por %p3602_p5, %p3601_p4 }
   0xf   :  { %p3604_p7 = pnand %p3603_p6, %p3597_p3 }
  0x11   :  { %3607 = shalt.err (!%p3604_p7)
}
  0x12   :  { %19 = dma.hbm_to_vmem [thread:$0]  %s4400_s0, 128, %s17_s10, [#allocation3]  }
  0x13   :  { %s3608_s25 = scalar_lea.hbm %s4401_s1, 10240 }
  0x14   :  { %p3609_p8 = scmp.ne.s32.totalorder %s4401_s1, %s3608_s25  ;;  %p3612_p9 = scmp.lt.u32.totalorder %s3608_s25, %s4401_s1 }
  0x16   :  { %p3614_p10 = pnand %p3612_p9, %p3609_p8 }
  0x18   :  { %3617 = shalt.err (!%p3614_p10)
}
  0x19   :  { %s3618_s30 = scalar_lea.vmem %s3681_s12, 10240  ;;  %p3623_p12 = scmp.lt.s32.totalorder %s3681_s12, %s3681_s12 }
  0x1a   :  { %p3619_p11 = scmp.ne.s32.totalorder %s3681_s12, %s3618_s30  ;;  %p3624_p13 = scmp.lt.s32.totalorder %s3618_s30, %s3618_s30 }
  0x1c   :  { %p3625_p0 = por %p3624_p13, %p3623_p12 }
  0x1e   :  { %p3626_p1 = pnand %p3625_p0, %p3619_p11 }
  0x20   :  { %3629 = shalt.err (!%p3626_p1)
}
  0x21   :  { %s3660_s0 = smov 640   ;;  %s3661_s3 = smov 40  }
  0x22   :  { %31 = dma.hbm_to_vmem [thread:$0]  %s4401_s1, 10240, %s3681_s12, [#allocation6], %s3660_s0, %s3660_s0, %s3661_s3  }
  0x23   :  { %3652 = dma.done.wait [#allocation3], 128  }
  0x24   :  { %3653 = vsyncadd [#allocation3], 4294967168 }
  0x25   :  { %3654 = dma.done.wait [#allocation6], 10240  }
  0x26   :  { %3655 = vsyncadd [#allocation6], 4294957056  ;;  %v3662_v0 = vmov 0.0   ;;  %v46_v1 = vld [vmem:[#allocation5 + $0x8] sm:$0xff]  ;;  %v48_v2 = vld [vmem:[#allocation5 + $0x30] sm:$0xff]  ;;  %vm3664_vm0 = vmmov 0  }
  0x27   :  { %141 = vmatprep.mubr.f32.mxu0 %v3662_v0  ;;  %245 = vmatprep.mubr.f32.mxu1 %v3662_v0  ;;  %v45_v3 = vld [vmem:[#allocation5] sm:$0xff]  ;;  %v3714_v4 = vpack.c.bf16 %v48_v2, %v46_v1  ;;  %v47_v5 = vld [vmem:[#allocation5 + $0x28] sm:$0xff]  ;;  %v50_v6 = vld [vmem:[#allocation5 + $0x58] sm:$0xff]  ;;  %s3665_s1 = smov [#allocation7]  }
  0x28   :  { %v52_v7 = vld [vmem:[#allocation5 + $0x80] sm:$0xff]  ;;  %v3716_v8 = vpack.c.bf16 %v47_v5, %v45_v3  ;;  %v49_v10 = vld [vmem:[#allocation5 + $0x50] sm:$0xff]  ;;  %v51_v11 = vld [vmem:[#allocation5 + $0x78] sm:$0xff]  ;;  %s2448_s6 = sshll.u32 %s3665_s1, 4  ;;  %s2449_s6 = int_to_ptr.vmem [resolvable:$true] %s2448_s6 }
  0x29   :  { %v3718_v9 = vpack.c.bf16 %v52_v7, %v50_v6  ;;  %v54_v12 = vld [vmem:[#allocation5 + $0xa8] sm:$0xff]  ;;  %2875 = vmatprep.subr.bf16.mxu0 %v3714_v4  ;;  %v56_v13 = vld [vmem:[#allocation5 + $0xd0] sm:$0xff]  ;;  %v3722_v14 = vpack.c.bf16 %v51_v11, %v49_v10  ;;  %v53_v16 = vld [vmem:[#allocation5 + $0xa0] sm:$0xff]  ;;  %s3630_s7 = scalar_lea.vmem %s2449_s6, 128  ;;  %p3635_p3 = scmp.lt.s32.totalorder %s2449_s6, %s2449_s6 }
  0x2a   :  { %2877 = vmatpush1.bf16.msra.mxu0 %v3716_v8  ;;  %v3725_v15 = vpack.c.bf16 %v56_v13, %v54_v12  ;;  %v55_v17 = vld [vmem:[#allocation5 + $0xc8] sm:$0xff]  ;;  %v58_v18 = vld [vmem:[#allocation5 + $0xf8] sm:$0xff]  ;;  %v60_v19 = vld [vmem:[#allocation5 + $0x120] sm:$0xff]  ;;  %p3631_p2 = scmp.ne.s32.totalorder %s2449_s6, %s3630_s7  ;;  %p3636_p4 = scmp.lt.s32.totalorder %s3630_s7, %s3630_s7 }
  0x2b   :  { %2879 = vmatprep.subr.bf16.mxu0 %v3718_v9  ;;  %v3728_v20 = vpack.c.bf16 %v55_v17, %v53_v16  ;;  %v3731_v21 = vpack.c.bf16 %v60_v19, %v58_v18  ;;  %v57_v22 = vld [vmem:[#allocation5 + $0xf0] sm:$0xff]  ;;  %v59_v23 = vld [vmem:[#allocation5 + $0x118] sm:$0xff]  ;;  %v62_v24 = vld [vmem:[#allocation5 + $0x148] sm:$0xff] }
  0x2c   :  { %v64_v25 = vld [vmem:[#allocation5 + $0x170] sm:$0xff]  ;;  %v61_v26 = vld [vmem:[#allocation5 + $0x140] sm:$0xff]  ;;  %v63_v27 = vld [vmem:[#allocation5 + $0x168] sm:$0xff]  ;;  %v3734_v31 = vpack.c.bf16 %v59_v23, %v57_v22  ;;  %p3637_p5 = por %p3636_p4, %p3635_p3 }
  0x2d   :  { %v150_v28 = vld [vmem:[#allocation5 + $0x18] sm:$0xff]  ;;  %v152_v29 = vld [vmem:[#allocation5 + $0x40] sm:$0xff]  ;;  %v149_v30 = vld [vmem:[#allocation5 + $0x10] sm:$0xff]  ;;  %v3739_v36 = vpack.c.bf16 %v64_v25, %v62_v24  ;;  %v3750_v46 = vpack.c.bf16 %v63_v27, %v61_v26 }
  0x2e   :  { %2881 = vmatpush1.bf16.msra.mxu0 %v3722_v14  ;;  %v3736_v32 = vpack.c.bf16 %v152_v29, %v150_v28  ;;  %v151_v33 = vld [vmem:[#allocation5 + $0x38] sm:$0xff]  ;;  %v154_v34 = vld [vmem:[#allocation5 + $0x68] sm:$0xff]  ;;  %v156_v35 = vld [vmem:[#allocation5 + $0x90] sm:$0xff]  ;;  %p3638_p6 = pnand %p3637_p5, %p3631_p2 }
  0x2f   :  { %2883 = vmatprep.subr.bf16.mxu0 %v3725_v15  ;;  %v3741_v37 = vpack.c.bf16 %v151_v33, %v149_v30  ;;  %v3743_v38 = vpack.c.bf16 %v156_v35, %v154_v34  ;;  %v153_v39 = vld [vmem:[#allocation5 + $0x60] sm:$0xff]  ;;  %v155_v40 = vld [vmem:[#allocation5 + $0x88] sm:$0xff]  ;;  %v158_v41 = vld [vmem:[#allocation5 + $0xb8] sm:$0xff] }
  0x30   :  { %v66_v42 = vld [vmem:[#allocation5 + $0x198] sm:$0xff]  ;;  %v68_v43 = vld [vmem:[#allocation5 + $0x1c0] sm:$0xff]  ;;  %2907 = vmatprep.subr.bf16.mxu1 %v3736_v32  ;;  %v3747_v45 = vpack.c.bf16 %v155_v40, %v153_v39  ;;  %v65_v47 = vld [vmem:[#allocation5 + $0x190] sm:$0xff] }
  0x31   :  { %v160_v44 = vld [vmem:[#allocation5 + $0xe0] sm:$0xff]  ;;  %2909 = vmatpush1.bf16.msra.mxu1 %v3741_v37  ;;  %v157_v49 = vld [vmem:[#allocation5 + $0xb0] sm:$0xff]  ;;  %v159_v50 = vld [vmem:[#allocation5 + $0xd8] sm:$0xff]  ;;  %v3756_v51 = vpack.c.bf16 %v68_v43, %v66_v42 }
  0x32   :  { %2885 = vmatpush1.bf16.msra.mxu0 %v3728_v20  ;;  %2911 = vmatprep.subr.bf16.mxu1 %v3743_v38  ;;  %v3753_v48 = vpack.c.bf16 %v160_v44, %v158_v41  ;;  %v67_v52 = vld [vmem:[#allocation5 + $0x1b8] sm:$0xff]  ;;  %v162_v53 = vld [vmem:[#allocation5 + $0x108] sm:$0xff]  ;;  %v164_v54 = vld [vmem:[#allocation5 + $0x130] sm:$0xff]  ;;  %v3759_v57 = vpack.c.bf16 %v159_v50, %v157_v49 }
  0x33   :  { %2887 = vmatprep.subr.bf16.mxu0 %v3731_v21  ;;  %v70_v55 = vld [vmem:[#allocation5 + $0x1e8] sm:$0xff]  ;;  %v72_v56 = vld [vmem:[#allocation5 + $0x210] sm:$0xff]  ;;  %v3762_v58 = vpack.c.bf16 %v67_v52, %v65_v47  ;;  %v69_v59 = vld [vmem:[#allocation5 + $0x1e0] sm:$0xff]  ;;  %v3765_v60 = vpack.c.bf16 %v164_v54, %v162_v53  ;;  %v3663_v54 = vmov 0.0|0.0  }
  0x34   :  { %v161_v61 = vld [vmem:[#allocation5 + $0x100] sm:$0xff]  ;;  %v163_v62 = vld [vmem:[#allocation5 + $0x128] sm:$0xff]  ;;  %v3768_v63 = vpack.c.bf16 %v72_v56, %v70_v55  ;;  %v166_v2 = vld [vmem:[#allocation5 + $0x158] sm:$0xff] }
  0x35   :  { %2913 = vmatpush1.bf16.msra.mxu1 %v3747_v45  ;;  %v71_v1 = vld [vmem:[#allocation5 + $0x208] sm:$0xff]  ;;  %v168_v3 = vld [vmem:[#allocation5 + $0x180] sm:$0xff]  ;;  %v74_v5 = vld [vmem:[#allocation5 + $0x238] sm:$0xff]  ;;  %v3771_v7 = vpack.c.bf16 %v163_v62, %v161_v61 }
  0x36   :  { %2889 = vmatpush1.bf16.msra.mxu0 %v3734_v31  ;;  %2915 = vmatprep.subr.bf16.mxu1 %v3753_v48  ;;  %v76_v6 = vld [vmem:[#allocation5 + $0x260] sm:$0xff]  ;;  %v3774_v10 = vpack.c.bf16 %v71_v1, %v69_v59  ;;  %v73_v11 = vld [vmem:[#allocation5 + $0x230] sm:$0xff]  ;;  %v3777_v12 = vpack.c.bf16 %v168_v3, %v166_v2  ;;  %v167_v16 = vld [vmem:[#allocation5 + $0x178] sm:$0xff] }
  0x37   :  { %2891 = vmatprep.subr.bf16.mxu0 %v3739_v36  ;;  %v165_v13 = vld [vmem:[#allocation5 + $0x150] sm:$0xff]  ;;  %v3780_v17 = vpack.c.bf16 %v76_v6, %v74_v5  ;;  %v75_v18 = vld [vmem:[#allocation5 + $0x258] sm:$0xff]  ;;  %v170_v19 = vld [vmem:[#allocation5 + $0x1a8] sm:$0xff] }
  0x38   :  { %v172_v22 = vld [vmem:[#allocation5 + $0x1d0] sm:$0xff]  ;;  %v3783_v23 = vpack.c.bf16 %v167_v16, %v165_v13  ;;  %v3786_v24 = vpack.c.bf16 %v75_v18, %v73_v11  ;;  %v169_v26 = vld [vmem:[#allocation5 + $0x1a0] sm:$0xff]  ;;  %v171_v27 = vld [vmem:[#allocation5 + $0x1c8] sm:$0xff] }
  0x39   :  { %2917 = vmatpush1.bf16.msra.mxu1 %v3759_v57  ;;  %v3789_v25 = vpack.c.bf16 %v172_v22, %v170_v19  ;;  %v174_v28 = vld [vmem:[#allocation5 + $0x1f8] sm:$0xff]  ;;  %v176_v29 = vld [vmem:[#allocation5 + $0x220] sm:$0xff]  ;;  %v3793_v30 = vpack.c.bf16 %v171_v27, %v169_v26  ;;  %v173_v35 = vld [vmem:[#allocation5 + $0x1f0] sm:$0xff] }
  0x3a   :  { %2893 = vmatpush1.bf16.msra.mxu0 %v3750_v46  ;;  %2919 = vmatprep.subr.bf16.mxu1 %v3765_v60  ;;  %v43_v33 = vld [vmem:[#allocation2] sm:$0x1]  ;;  %v3797_v34 = vpack.c.bf16 %v176_v29, %v174_v28  ;;  %v178_v40 = vld [vmem:[#allocation5 + $0x248] sm:$0xff]  ;;  %v180_v41 = vld [vmem:[#allocation5 + $0x270] sm:$0xff] }
  0x3b   :  { %2895 = vmatprep.subr.bf16.mxu0 %v3756_v51  ;;  %v175_v39 = vld [vmem:[#allocation5 + $0x218] sm:$0xff]  ;;  %v3803_v43 = vpack.c.bf16 %v180_v41, %v178_v40  ;;  %v177_v44 = vld [vmem:[#allocation5 + $0x240] sm:$0xff]  ;;  %v179_v47 = vld [vmem:[#allocation5 + $0x268] sm:$0xff] }
  0x3c   :  { %v3800_v42 = vpack.c.bf16 %v175_v39, %v173_v35  ;;  %v3807_v49 = vpack.c.bf16 %v179_v47, %v177_v44  ;;  %v254_v50 = vld [vmem:[#allocation5 + $0x20] sm:$0xff]  ;;  %v255_v52 = vld [vmem:[#allocation5 + $0x48] sm:$0xff]  ;;  %v256_v53 = vld [vmem:[#allocation5 + $0x70] sm:$0xff] }
  0x3d   :  { %2921 = vmatpush1.bf16.msra.mxu1 %v3771_v7  ;;  %v3812_v55 = vpack.c.bf16 %v255_v52, %v254_v50  ;;  %v257_v56 = vld [vmem:[#allocation5 + $0x98] sm:$0xff]  ;;  %v258_v61 = vld [vmem:[#allocation5 + $0xc0] sm:$0xff]  ;;  %v259_v62 = vld [vmem:[#allocation5 + $0xe8] sm:$0xff]  ;;  %v38_v52 = vlaneseq }
  0x3e   :  { %2897 = vmatpush1.bf16.msra.mxu0 %v3762_v58  ;;  %2923 = vmatprep.subr.bf16.mxu1 %v3777_v12  ;;  %v3815_v59 = vpack.c.bf16 %v257_v56, %v256_v53  ;;  %v3819_v1 = vpack.c.bf16 %v259_v62, %v258_v61  ;;  %v260_v2 = vld [vmem:[#allocation5 + $0x110] sm:$0xff]  ;;  %v261_v3 = vld [vmem:[#allocation5 + $0x138] sm:$0xff]  ;;  %v262_v6 = vld [vmem:[#allocation5 + $0x160] sm:$0xff] }
  0x3f   :  { %2899 = vmatprep.subr.bf16.mxu0 %v3768_v63  ;;  %v3823_v5 = vpack.c.bf16 %v261_v3, %v260_v2  ;;  %v263_v11 = vld [vmem:[#allocation5 + $0x188] sm:$0xff]  ;;  %v264_v16 = vld [vmem:[#allocation5 + $0x1b0] sm:$0xff]  ;;  %v265_v18 = vld [vmem:[#allocation5 + $0x1d8] sm:$0xff]  ;;  %v39_v53 = vand.u32 127, %v38_v52 }
  0x40   :  { %v3827_v13 = vpack.c.bf16 %v263_v11, %v262_v6  ;;  %v3831_v19 = vpack.c.bf16 %v265_v18, %v264_v16  ;;  %v266_v22 = vld [vmem:[#allocation5 + $0x200] sm:$0xff]  ;;  %v267_v26 = vld [vmem:[#allocation5 + $0x228] sm:$0xff]  ;;  %v268_v35 = vld [vmem:[#allocation5 + $0x250] sm:$0xff] }
  0x41   :  { %2925 = vmatpush1.bf16.msra.mxu1 %v3783_v23  ;;  %v3835_v27 = vpack.c.bf16 %v267_v26, %v266_v22  ;;  %v269_v39 = vld [vmem:[#allocation5 + $0x278] sm:$0xff]  ;;  %vm40_vm1 = vcmp.ge.s32.totalorder %v39_v53, 38  ;;  %vm41_vm2 = vcmp.lt.s32.totalorder %v39_v53, 70  ;;  %v964_v22 = vld [vmem:[#allocation5 + $0x170] sm:$0xff] }
  0x42   :  { %2901 = vmatpush1.bf16.msra.mxu0 %v3774_v10  ;;  %2927 = vmatprep.subr.bf16.mxu1 %v3789_v25  ;;  %v3857_v40 = vpack.c.bf16 %v269_v39, %v268_v35  ;;  %vm3880_vm3 = vmand %vm40_vm1, %vm41_vm2  ;;  %v343_v2 = vld [vmem:[#allocation2 + $0x1] sm:$0x1]  ;;  %v968_v35 = vld [vmem:[#allocation5 + $0x1c0] sm:$0xff] }
  0x43   :  { %2903 = vmatprep.subr.bf16.mxu0 %v3780_v17 }
  0x45   :  { %2929 = vmatpush1.bf16.msra.mxu1 %v3793_v30 }
  0x46   :  { %2905 = vmatpush1.bf16.msra.mxu0 %v3786_v24  ;;  %2931 = vmatprep.subr.bf16.mxu1 %v3797_v34 }
  0x47   :  { %2938 = vmatprep.subr.bf16.mxu0 %v3663_v54 }
  0x49   :  { %142 = vmatmul.mubr.f32.vlgmr.msra.gmra.mrb[0].mxu0 %v43_v33  ;;  %2933 = vmatpush1.bf16.msra.mxu1 %v3800_v42 }
  0x4a   :  { %2935 = vmatprep.subr.bf16.mxu1 %v3803_v43  ;;  %2940 = vmatpush3.bf16.msra.mxu0 %v3812_v55 }
  0x4b   :  { %2941 = vmatprep.subr.bf16.mxu0 %v3663_v54  ;;  %2626 = vmatprep.mubr.msk.f32.mxu0 %vm3664_vm0, %v3662_v0 }
  0x4d   :  { %2937 = vmatpush1.bf16.msra.mxu1 %v3807_v49 }
  0x4e   :  { %2963 = vmatprep.subr.bf16.mxu1 %v3714_v4  ;;  %2943 = vmatpush3.bf16.msra.mxu0 %v3815_v59 }
  0x4f   :  { %2944 = vmatprep.subr.bf16.mxu0 %v3663_v54 }
  0x52   :  { %2946 = vmatpush3.bf16.msra.mxu0 %v3819_v1 }
  0x53   :  { %2947 = vmatprep.subr.bf16.mxu0 %v3663_v54 }
  0x56   :  { %2949 = vmatpush3.bf16.msra.mxu0 %v3823_v5 }
  0x57   :  { %2950 = vmatprep.subr.bf16.mxu0 %v3663_v54 }
  0x5a   :  { %2952 = vmatpush3.bf16.msra.mxu0 %v3827_v13 }
  0x5b   :  { %2953 = vmatprep.subr.bf16.mxu0 %v3663_v54 }
  0x5e   :  { %2955 = vmatpush3.bf16.msra.mxu0 %v3831_v19 }
  0x5f   :  { %2956 = vmatprep.subr.bf16.mxu0 %v3663_v54 }
  0x62   :  { %2958 = vmatpush3.bf16.msra.mxu0 %v3835_v27 }
  0x63   :  { %2959 = vmatprep.subr.bf16.mxu0 %v3663_v54 }
  0x66   :  { %2961 = vmatpush3.bf16.msra.mxu0 %v3857_v40 }
  0x67   :  { %2995 = vmatprep.subr.bf16.mxu0 %v3736_v32 }
 0x11c   :  { %v143_v28 = vpop.f32.mrb[0].mxu0 }
 0x11d   :  { %v148_v29 = vmax.f32 %v143_v28, 0.0  ;;  %v145_v33 = vpop.f32.mrb[1].mxu0  ;;  %v961_v28 = vld [vmem:[#allocation5 + $0x140] sm:$0xff] }
 0x11f   :  { %246 = vmatmul.mubr.f32.vlgmr.msra.gmra.mrb[0].mxu1 %v148_v29  ;;  %v963_v29 = vld [vmem:[#allocation5 + $0x168] sm:$0xff] }
 0x120   :  { %2965 = vmatpush1.bf16.msra.mxu1 %v3716_v8  ;;  %441 = vmatprep.mubr.f32.mxu1 %v3662_v0  ;;  %v3983_v39 = vpack.c.bf16 %v963_v29, %v961_v28  ;;  %v1065_v28 = vld [vmem:[#allocation5 + $0x150] sm:$0xff]  ;;  %v1067_v29 = vld [vmem:[#allocation5 + $0x178] sm:$0xff] }
 0x121   :  { %2967 = vmatprep.subr.bf16.mxu1 %v3718_v9 }
 0x124   :  { %2969 = vmatpush1.bf16.msra.mxu1 %v3722_v14 }
 0x125   :  { %2971 = vmatprep.subr.bf16.mxu1 %v3725_v15 }
 0x128   :  { %2973 = vmatpush1.bf16.msra.mxu1 %v3728_v20 }
 0x129   :  { %2975 = vmatprep.subr.bf16.mxu1 %v3731_v21 }
 0x12c   :  { %2977 = vmatpush1.bf16.msra.mxu1 %v3734_v31 }
 0x12d   :  { %2979 = vmatprep.subr.bf16.mxu1 %v3739_v36 }
 0x130   :  { %2981 = vmatpush1.bf16.msra.mxu1 %v3750_v46 }
 0x131   :  { %2983 = vmatprep.subr.bf16.mxu1 %v3756_v51 }
 0x134   :  { %2985 = vmatpush1.bf16.msra.mxu1 %v3762_v58 }
 0x135   :  { %2987 = vmatprep.subr.bf16.mxu1 %v3768_v63 }
 0x138   :  { %2989 = vmatpush1.bf16.msra.mxu1 %v3774_v10 }
 0x139   :  { %2991 = vmatprep.subr.bf16.mxu1 %v3780_v17 }
 0x13c   :  { %2993 = vmatpush1.bf16.msra.mxu1 %v3786_v24 }
 0x13d   :  { %3026 = vmatprep.subr.bf16.mxu1 %v3663_v54 }
 0x1f2   :  { %v247_v41 = vpop.f32.mrb[0].mxu1 }
 0x1f3   :  { %v249_v44 = vpop.f32.mrb[1].mxu1 }
 0x1f4   :  { %v252_v47 = vadd.f32 %v249_v44, %v145_v33  ;;  %v966_v33 = vld [vmem:[#allocation5 + $0x198] sm:$0xff] }
 0x1f5   :  { %v967_v44 = vld [vmem:[#allocation5 + $0x1b8] sm:$0xff] }
 0x1f6   :  { %v253_v50 = vmax.f32 %v252_v47, 0.0  ;;  %v970_v47 = vld [vmem:[#allocation5 + $0x1e8] sm:$0xff] }
 0x1f8   :  { %2627 = vmatmul.mubr.f32.vlgmr.msra.gmra.mrb[2].mxu0 %v253_v50  ;;  %v972_v50 = vld [vmem:[#allocation5 + $0x210] sm:$0xff] }
 0x1f9   :  { %2997 = vmatpush1.bf16.msra.mxu0 %v3741_v37  ;;  %545 = vmatprep.mubr.f32.mxu0 %v3662_v0  ;;  %v3992_v53 = vpack.c.bf16 %v972_v50, %v970_v47  ;;  %v1069_v47 = vld [vmem:[#allocation5 + $0x1a0] sm:$0xff]  ;;  %v1071_v50 = vld [vmem:[#allocation5 + $0x1c8] sm:$0xff] }
 0x1fa   :  { %2999 = vmatprep.subr.bf16.mxu0 %v3743_v38 }
 0x1fd   :  { %3001 = vmatpush1.bf16.msra.mxu0 %v3747_v45 }
 0x1fe   :  { %3003 = vmatprep.subr.bf16.mxu0 %v3753_v48 }
 0x201   :  { %3005 = vmatpush1.bf16.msra.mxu0 %v3759_v57 }
 0x202   :  { %3007 = vmatprep.subr.bf16.mxu0 %v3765_v60 }
 0x205   :  { %3009 = vmatpush1.bf16.msra.mxu0 %v3771_v7 }
 0x206   :  { %3011 = vmatprep.subr.bf16.mxu0 %v3777_v12 }
 0x209   :  { %3013 = vmatpush1.bf16.msra.mxu0 %v3783_v23 }
 0x20a   :  { %3015 = vmatprep.subr.bf16.mxu0 %v3789_v25 }
 0x20d   :  { %3017 = vmatpush1.bf16.msra.mxu0 %v3793_v30 }
 0x20e   :  { %3019 = vmatprep.subr.bf16.mxu0 %v3797_v34 }
 0x211   :  { %3021 = vmatpush1.bf16.msra.mxu0 %v3800_v42 }
 0x212   :  { %3023 = vmatprep.subr.bf16.mxu0 %v3803_v43 }
 0x215   :  { %3025 = vmatpush1.bf16.msra.mxu0 %v3807_v49 }
 0x216   :  { %3051 = vmatprep.subr.bf16.mxu0 %v3714_v4 }
 0x2cb   :  { %v336_v61 = vpop.f32.mrb[2].mxu0 }
 0x2cc   :  { %v340_v62 = vadd.f32 %v336_v61, %v247_v41  ;;  %v2628_v3 = vpop.f32.mrb[3].mxu0  ;;  %v965_v41 = vld [vmem:[#allocation5 + $0x190] sm:$0xff]  ;;  %v969_v61 = vld [vmem:[#allocation5 + $0x1e0] sm:$0xff] }
 0x2cd   :  { %v3989_v52 = vpack.c.bf16 %v967_v44, %v965_v41  ;;  %v4035_v41 = vpack.c.bf16 %v1067_v29, %v1065_v28  ;;  %v1160_v28 = vld [vmem:[#allocation5 + $0x110] sm:$0xff]  ;;  %v1161_v29 = vld [vmem:[#allocation5 + $0x138] sm:$0xff] }
 0x2ce   :  { %341 = vst [vmem:[#allocation7] sm:$0x1] %v340_v62  ;;  %v342_v6 = vsel %vm3880_vm3, %v340_v62, 0.0  ;;  %v971_v62 = vld [vmem:[#allocation5 + $0x208] sm:$0xff] }
 0x2cf   :  { %v344_v11 = vadd.f32 %v343_v2, %v342_v6  ;;  %v3995_v2 = vpack.c.bf16 %v971_v62, %v969_v61  ;;  %v1074_v61 = vld [vmem:[#allocation5 + $0x1f8] sm:$0xff]  ;;  %v1076_v62 = vld [vmem:[#allocation5 + $0x220] sm:$0xff] }
 0x2d1   :  { %442 = vmatmul.mubr.f32.vlgmr.msra.gmra.mrb[2].mxu1 %v344_v11 }
 0x2d2   :  { %3028 = vmatpush3.bf16.msra.mxu1 %v3812_v55  ;;  %2661 = vmatprep.mubr.msk.f32.mxu1 %vm3664_vm0, %v3662_v0 }
 0x2d3   :  { %3029 = vmatprep.subr.bf16.mxu1 %v3663_v54 }
 0x2d6   :  { %3031 = vmatpush3.bf16.msra.mxu1 %v3815_v59 }
 0x2d7   :  { %3032 = vmatprep.subr.bf16.mxu1 %v3663_v54 }
 0x2da   :  { %3034 = vmatpush3.bf16.msra.mxu1 %v3819_v1 }
 0x2db   :  { %3035 = vmatprep.subr.bf16.mxu1 %v3663_v54 }
 0x2de   :  { %3037 = vmatpush3.bf16.msra.mxu1 %v3823_v5 }
 0x2df   :  { %3038 = vmatprep.subr.bf16.mxu1 %v3663_v54 }
 0x2e2   :  { %3040 = vmatpush3.bf16.msra.mxu1 %v3827_v13 }
 0x2e3   :  { %3041 = vmatprep.subr.bf16.mxu1 %v3663_v54 }
 0x2e6   :  { %3043 = vmatpush3.bf16.msra.mxu1 %v3831_v19 }
 0x2e7   :  { %3044 = vmatprep.subr.bf16.mxu1 %v3663_v54 }
 0x2ea   :  { %3046 = vmatpush3.bf16.msra.mxu1 %v3835_v27 }
 0x2eb   :  { %3047 = vmatprep.subr.bf16.mxu1 %v3663_v54 }
 0x2ee   :  { %3049 = vmatpush3.bf16.msra.mxu1 %v3857_v40 }
 0x2ef   :  { %3083 = vmatprep.subr.bf16.mxu1 %v3736_v32 }
 0x3a4   :  { %v443_v4 = vpop.f32.mrb[2].mxu1 }
 0x3a5   :  { %v448_v16 = vmax.f32 %v443_v4, 0.0  ;;  %v445_v18 = vpop.f32.mrb[3].mxu1 }
 0x3a7   :  { %546 = vmatmul.mubr.f32.vlgmr.msra.gmra.mrb[4].mxu0 %v448_v16  ;;  %v974_v16 = vld [vmem:[#allocation5 + $0x238] sm:$0xff] }
 0x3a8   :  { %3053 = vmatpush1.bf16.msra.mxu0 %v3716_v8  ;;  %741 = vmatprep.mubr.f32.mxu0 %v3662_v0 }
 0x3a9   :  { %3055 = vmatprep.subr.bf16.mxu0 %v3718_v9 }
 0x3ac   :  { %3057 = vmatpush1.bf16.msra.mxu0 %v3722_v14 }
 0x3ad   :  { %3059 = vmatprep.subr.bf16.mxu0 %v3725_v15 }
 0x3b0   :  { %3061 = vmatpush1.bf16.msra.mxu0 %v3728_v20 }
 0x3b1   :  { %3063 = vmatprep.subr.bf16.mxu0 %v3731_v21 }
 0x3b4   :  { %3065 = vmatpush1.bf16.msra.mxu0 %v3734_v31  ;;  %v643_v31 = vld [vmem:[#allocation2 + $0x2] sm:$0x1] }
 0x3b5   :  { %3067 = vmatprep.subr.bf16.mxu0 %v3739_v36 }
 0x3b8   :  { %3069 = vmatpush1.bf16.msra.mxu0 %v3750_v46 }
 0x3b9   :  { %3071 = vmatprep.subr.bf16.mxu0 %v3756_v51  ;;  %v948_v51 = vld [vmem:[#allocation5 + $0x30] sm:$0xff] }
 0x3bc   :  { %3073 = vmatpush1.bf16.msra.mxu0 %v3762_v58 }
 0x3bd   :  { %3075 = vmatprep.subr.bf16.mxu0 %v3768_v63  ;;  %v950_v63 = vld [vmem:[#allocation5 + $0x58] sm:$0xff] }
 0x3c0   :  { %3077 = vmatpush1.bf16.msra.mxu0 %v3774_v10 }
 0x3c1   :  { %3079 = vmatprep.subr.bf16.mxu0 %v3780_v17  ;;  %v949_v17 = vld [vmem:[#allocation5 + $0x50] sm:$0xff] }
 0x3c4   :  { %3081 = vmatpush1.bf16.msra.mxu0 %v3786_v24  ;;  %v954_v24 = vld [vmem:[#allocation5 + $0xa8] sm:$0xff] }
 0x3c5   :  { %3114 = vmatprep.subr.bf16.mxu0 %v3663_v54 }
 0x47a   :  { %v547_v8 = vpop.f32.mrb[4].mxu0 }
 0x47b   :  { %v549_v9 = vpop.f32.mrb[5].mxu0 }
 0x47c   :  { %v552_v14 = vadd.f32 %v549_v9, %v445_v18  ;;  %v976_v18 = vld [vmem:[#allocation5 + $0x260] sm:$0xff]  ;;  %v973_v9 = vld [vmem:[#allocation5 + $0x230] sm:$0xff] }
 0x47e   :  { %v553_v15 = vmax.f32 %v552_v14, 0.0  ;;  %v975_v14 = vld [vmem:[#allocation5 + $0x258] sm:$0xff] }
 0x480   :  { %2662 = vmatmul.mubr.f32.vlgmr.msra.gmra.mrb[4].mxu1 %v553_v15  ;;  %v4004_v15 = vpack.c.bf16 %v975_v14, %v973_v9  ;;  %v1080_v9 = vld [vmem:[#allocation5 + $0x270] sm:$0xff] }
 0x481   :  { %3085 = vmatpush1.bf16.msra.mxu1 %v3741_v37  ;;  %845 = vmatprep.mubr.f32.mxu1 %v3662_v0 }
 0x482   :  { %3087 = vmatprep.subr.bf16.mxu1 %v3743_v38 }
 0x485   :  { %3089 = vmatpush1.bf16.msra.mxu1 %v3747_v45 }
 0x486   :  { %3091 = vmatprep.subr.bf16.mxu1 %v3753_v48  ;;  %v946_v48 = vld [vmem:[#allocation5 + $0x8] sm:$0xff] }
 0x487   :  { %v3957_v58 = vpack.c.bf16 %v948_v51, %v946_v48  ;;  %v1053_v48 = vld [vmem:[#allocation5 + $0x60] sm:$0xff]  ;;  %v1055_v51 = vld [vmem:[#allocation5 + $0x88] sm:$0xff] }
 0x489   :  { %3093 = vmatpush1.bf16.msra.mxu1 %v3759_v57  ;;  %v945_v57 = vld [vmem:[#allocation5] sm:$0xff] }
 0x48a   :  { %3095 = vmatprep.subr.bf16.mxu1 %v3765_v60  ;;  %v947_v60 = vld [vmem:[#allocation5 + $0x28] sm:$0xff] }
 0x48b   :  { %v3959_v10 = vpack.c.bf16 %v947_v60, %v945_v57  ;;  %v1058_v57 = vld [vmem:[#allocation5 + $0xb8] sm:$0xff]  ;;  %v1060_v60 = vld [vmem:[#allocation5 + $0xe0] sm:$0xff] }
 0x48d   :  { %3097 = vmatpush1.bf16.msra.mxu1 %v3771_v7  ;;  %v952_v7 = vld [vmem:[#allocation5 + $0x80] sm:$0xff] }
 0x48e   :  { %3099 = vmatprep.subr.bf16.mxu1 %v3777_v12  ;;  %v3961_v12 = vpack.c.bf16 %v952_v7, %v950_v63  ;;  %v4017_v63 = vpack.c.bf16 %v1055_v51, %v1053_v48  ;;  %v4020_v7 = vpack.c.bf16 %v1060_v60, %v1058_v57  ;;  %v1077_v51 = vld [vmem:[#allocation5 + $0x240] sm:$0xff]  ;;  %v1079_v57 = vld [vmem:[#allocation5 + $0x268] sm:$0xff] }
 0x48f   :  { %v4059_v60 = vpack.c.bf16 %v1079_v57, %v1077_v51 }
 0x491   :  { %3101 = vmatpush1.bf16.msra.mxu1 %v3783_v23  ;;  %v951_v23 = vld [vmem:[#allocation5 + $0x78] sm:$0xff] }
 0x492   :  { %3103 = vmatprep.subr.bf16.mxu1 %v3789_v25  ;;  %v956_v25 = vld [vmem:[#allocation5 + $0xd0] sm:$0xff] }
 0x495   :  { %3105 = vmatpush1.bf16.msra.mxu1 %v3793_v30  ;;  %v3965_v30 = vpack.c.bf16 %v951_v23, %v949_v17  ;;  %v1057_v17 = vld [vmem:[#allocation5 + $0xb0] sm:$0xff]  ;;  %v1059_v23 = vld [vmem:[#allocation5 + $0xd8] sm:$0xff] }
 0x496   :  { %3107 = vmatprep.subr.bf16.mxu1 %v3797_v34  ;;  %v3968_v34 = vpack.c.bf16 %v956_v25, %v954_v24  ;;  %v1062_v24 = vld [vmem:[#allocation5 + $0x108] sm:$0xff]  ;;  %v1064_v25 = vld [vmem:[#allocation5 + $0x130] sm:$0xff] }
 0x499   :  { %3109 = vmatpush1.bf16.msra.mxu1 %v3800_v42  ;;  %v953_v42 = vld [vmem:[#allocation5 + $0xa0] sm:$0xff] }
 0x49a   :  { %3111 = vmatprep.subr.bf16.mxu1 %v3803_v43  ;;  %v955_v43 = vld [vmem:[#allocation5 + $0xc8] sm:$0xff] }
 0x49d   :  { %3113 = vmatpush1.bf16.msra.mxu1 %v3807_v49  ;;  %v958_v49 = vld [vmem:[#allocation5 + $0xf8] sm:$0xff] }
 0x49e   :  { %3139 = vmatprep.subr.bf16.mxu1 %v3957_v58 }
 0x553   :  { %v636_v20 = vpop.f32.mrb[4].mxu1 }
 0x554   :  { %v640_v21 = vadd.f32 %v636_v20, %v547_v8  ;;  %v2663_v32 = vpop.f32.mrb[5].mxu1  ;;  %v4002_v8 = vpack.c.bf16 %v976_v18, %v974_v16  ;;  %v1050_v20 = vld [vmem:[#allocation5 + $0x18] sm:$0xff]  ;;  %v1078_v18 = vld [vmem:[#allocation5 + $0x248] sm:$0xff] }
 0x555   :  { %v1075_v16 = vld [vmem:[#allocation5 + $0x218] sm:$0xff] }
 0x556   :  { %641 = vst [vmem:[#allocation7 + $0x1] sm:$0x1] %v640_v21  ;;  %v642_v36 = vsel %vm3880_vm3, %v640_v21, 0.0  ;;  %v1052_v21 = vld [vmem:[#allocation5 + $0x40] sm:$0xff] }
 0x557   :  { %v644_v37 = vadd.f32 %v643_v31, %v642_v36  ;;  %v1049_v31 = vld [vmem:[#allocation5 + $0x10] sm:$0xff]  ;;  %v4009_v32 = vpack.c.bf16 %v1052_v21, %v1050_v20  ;;  %v1051_v36 = vld [vmem:[#allocation5 + $0x38] sm:$0xff]  ;;  %v4050_v20 = vpack.c.bf16 %v1080_v9, %v1078_v18  ;;  %v1167_v18 = vld [vmem:[#allocation5 + $0x228] sm:$0xff] }
 0x559   :  { %742 = vmatmul.mubr.f32.vlgmr.msra.gmra.mrb[6].mxu0 %v644_v37  ;;  %v1054_v37 = vld [vmem:[#allocation5 + $0x68] sm:$0xff] }
 0x55a   :  { %3116 = vmatpush3.bf16.msra.mxu0 %v3812_v55  ;;  %2696 = vmatprep.mubr.msk.f32.mxu0 %vm3664_vm0, %v3662_v0  ;;  %v960_v55 = vld [vmem:[#allocation5 + $0x120] sm:$0xff] }
 0x55b   :  { %3117 = vmatprep.subr.bf16.mxu0 %v3663_v54 }
 0x55e   :  { %3119 = vmatpush3.bf16.msra.mxu0 %v3815_v59  ;;  %v3971_v59 = vpack.c.bf16 %v955_v43, %v953_v42  ;;  %v4023_v42 = vpack.c.bf16 %v1059_v23, %v1057_v17  ;;  %v4026_v43 = vpack.c.bf16 %v1064_v25, %v1062_v24  ;;  %v1155_v17 = vld [vmem:[#allocation5 + $0x48] sm:$0xff]  ;;  %v1156_v23 = vld [vmem:[#allocation5 + $0x70] sm:$0xff]  ;;  %v1157_v25 = vld [vmem:[#allocation5 + $0x98] sm:$0xff] }
 0x55f   :  { %3120 = vmatprep.subr.bf16.mxu0 %v3663_v54 }
 0x562   :  { %3122 = vmatpush3.bf16.msra.mxu0 %v3819_v1  ;;  %v3974_v1 = vpack.c.bf16 %v960_v55, %v958_v49  ;;  %v1061_v49 = vld [vmem:[#allocation5 + $0x100] sm:$0xff]  ;;  %v1063_v55 = vld [vmem:[#allocation5 + $0x128] sm:$0xff] }
 0x563   :  { %3123 = vmatprep.subr.bf16.mxu0 %v3663_v54 }
 0x566   :  { %3125 = vmatpush3.bf16.msra.mxu0 %v3823_v5  ;;  %v957_v5 = vld [vmem:[#allocation5 + $0xf0] sm:$0xff] }
 0x567   :  { %3126 = vmatprep.subr.bf16.mxu0 %v3663_v54 }
 0x56a   :  { %3128 = vmatpush3.bf16.msra.mxu0 %v3827_v13  ;;  %v959_v13 = vld [vmem:[#allocation5 + $0x118] sm:$0xff] }
 0x56b   :  { %3129 = vmatprep.subr.bf16.mxu0 %v3663_v54  ;;  %v3977_v26 = vpack.c.bf16 %v959_v13, %v957_v5  ;;  %v1066_v5 = vld [vmem:[#allocation5 + $0x158] sm:$0xff]  ;;  %v1068_v13 = vld [vmem:[#allocation5 + $0x180] sm:$0xff] }
 0x56e   :  { %3131 = vmatpush3.bf16.msra.mxu0 %v3831_v19  ;;  %v962_v19 = vld [vmem:[#allocation5 + $0x148] sm:$0xff] }
 0x56f   :  { %3132 = vmatprep.subr.bf16.mxu0 %v3663_v54 }
 0x572   :  { %3134 = vmatpush3.bf16.msra.mxu0 %v3835_v27  ;;  %v3980_v27 = vpack.c.bf16 %v964_v22, %v962_v19  ;;  %v4029_v19 = vpack.c.bf16 %v1063_v55, %v1061_v49  ;;  %v4032_v22 = vpack.c.bf16 %v1068_v13, %v1066_v5  ;;  %v4066_v49 = vpack.c.bf16 %v1157_v25, %v1156_v23  ;;  %v1158_v55 = vld [vmem:[#allocation5 + $0xc0] sm:$0xff]  ;;  %v1159_v5 = vld [vmem:[#allocation5 + $0xe8] sm:$0xff] }
 0x573   :  { %3135 = vmatprep.subr.bf16.mxu0 %v3663_v54  ;;  %v4070_v13 = vpack.c.bf16 %v1159_v5, %v1158_v55  ;;  %v1243_v55 = vld [vmem:[#allocation2 + $0x4] sm:$0x1] }
 0x576   :  { %3137 = vmatpush3.bf16.msra.mxu0 %v3857_v40  ;;  %v3986_v40 = vpack.c.bf16 %v968_v35, %v966_v33  ;;  %v1070_v33 = vld [vmem:[#allocation5 + $0x1a8] sm:$0xff]  ;;  %v1072_v35 = vld [vmem:[#allocation5 + $0x1d0] sm:$0xff] }
 0x577   :  { %3171 = vmatprep.subr.bf16.mxu0 %v4009_v32  ;;  %v4038_v44 = vpack.c.bf16 %v1072_v35, %v1070_v33  ;;  %v4074_v33 = vpack.c.bf16 %v1161_v29, %v1160_v28  ;;  %v1162_v35 = vld [vmem:[#allocation5 + $0x160] sm:$0xff] }
 0x62c   :  { %v743_v38 = vpop.f32.mrb[6].mxu0 }
 0x62d   :  { %v748_v45 = vmax.f32 %v743_v38, 0.0  ;;  %v745_v46 = vpop.f32.mrb[7].mxu0  ;;  %v1056_v38 = vld [vmem:[#allocation5 + $0x90] sm:$0xff] }
 0x62f   :  { %846 = vmatmul.mubr.f32.vlgmr.msra.gmra.mrb[6].mxu1 %v748_v45  ;;  %v4011_v45 = vpack.c.bf16 %v1051_v36, %v1049_v31  ;;  %v943_v36 = vld [vmem:[#allocation2 + $0x3] sm:$0x1] }
 0x630   :  { %1041 = vmatprep.mubr.f32.mxu1 %v3662_v0  ;;  %3141 = vmatpush1.bf16.msra.mxu1 %v3959_v10 }
 0x631   :  { %3143 = vmatprep.subr.bf16.mxu1 %v3961_v12 }
 0x634   :  { %3145 = vmatpush1.bf16.msra.mxu1 %v3965_v30 }
 0x635   :  { %3147 = vmatprep.subr.bf16.mxu1 %v3968_v34 }
 0x638   :  { %3149 = vmatpush1.bf16.msra.mxu1 %v3971_v59 }
 0x639   :  { %3151 = vmatprep.subr.bf16.mxu1 %v3974_v1 }
 0x63c   :  { %3153 = vmatpush1.bf16.msra.mxu1 %v3977_v26 }
 0x63d   :  { %3155 = vmatprep.subr.bf16.mxu1 %v3980_v27 }
 0x640   :  { %3157 = vmatpush1.bf16.msra.mxu1 %v3983_v39 }
 0x641   :  { %3159 = vmatprep.subr.bf16.mxu1 %v3986_v40 }
 0x644   :  { %3161 = vmatpush1.bf16.msra.mxu1 %v3989_v52 }
 0x645   :  { %3163 = vmatprep.subr.bf16.mxu1 %v3992_v53 }
 0x648   :  { %3165 = vmatpush1.bf16.msra.mxu1 %v3995_v2 }
 0x649   :  { %3167 = vmatprep.subr.bf16.mxu1 %v4002_v8 }
 0x64c   :  { %3169 = vmatpush1.bf16.msra.mxu1 %v4004_v15 }
 0x64d   :  { %3202 = vmatprep.subr.bf16.mxu1 %v3663_v54 }
 0x702   :  { %v3999_v3 = vpop.f32.mrb[6].mxu1 }
 0x703   :  { %v849_v6 = vpop.f32.mrb[7].mxu1 }
 0x704   :  { %v852_v11 = vadd.f32 %v849_v6, %v745_v46  ;;  %v4013_v46 = vpack.c.bf16 %v1056_v38, %v1054_v37  ;;  %v4041_v6 = vpack.c.bf16 %v1071_v50, %v1069_v47  ;;  %v1163_v47 = vld [vmem:[#allocation5 + $0x188] sm:$0xff] }
 0x705   :  { %v4078_v50 = vpack.c.bf16 %v1163_v47, %v1162_v35 }
 0x706   :  { %v853_v4 = vmax.f32 %v852_v11, 0.0  ;;  %v4044_v11 = vpack.c.bf16 %v1076_v62, %v1074_v61  ;;  %v1164_v61 = vld [vmem:[#allocation5 + $0x1b0] sm:$0xff]  ;;  %v1165_v62 = vld [vmem:[#allocation5 + $0x1d8] sm:$0xff] }
 0x708   :  { %2697 = vmatmul.mubr.f32.vlgmr.msra.gmra.mrb[8].mxu0 %v853_v4  ;;  %v1073_v4 = vld [vmem:[#allocation5 + $0x1f0] sm:$0xff] }
 0x709   :  { %1145 = vmatprep.mubr.f32.mxu0 %v3662_v0  ;;  %3173 = vmatpush1.bf16.msra.mxu0 %v4011_v45  ;;  %v4047_v14 = vpack.c.bf16 %v1075_v16, %v1073_v4  ;;  %v4082_v4 = vpack.c.bf16 %v1165_v62, %v1164_v61  ;;  %v1166_v16 = vld [vmem:[#allocation5 + $0x200] sm:$0xff]  ;;  %v1862_v61 = vld [vmem:[#allocation5 + $0x148] sm:$0xff]  ;;  %v1864_v62 = vld [vmem:[#allocation5 + $0x170] sm:$0xff] }
 0x70a   :  { %3175 = vmatprep.subr.bf16.mxu0 %v4013_v46  ;;  %v4086_v9 = vpack.c.bf16 %v1167_v18, %v1166_v16  ;;  %v4225_v16 = vpack.c.bf16 %v1864_v62, %v1862_v61  ;;  %v1861_v18 = vld [vmem:[#allocation5 + $0x140] sm:$0xff] }
 0x70d   :  { %3177 = vmatpush1.bf16.msra.mxu0 %v4017_v63 }
 0x70e   :  { %3179 = vmatprep.subr.bf16.mxu0 %v4020_v7 }
 0x711   :  { %3181 = vmatpush1.bf16.msra.mxu0 %v4023_v42 }
 0x712   :  { %3183 = vmatprep.subr.bf16.mxu0 %v4026_v43 }
 0x715   :  { %3185 = vmatpush1.bf16.msra.mxu0 %v4029_v19 }
 0x716   :  { %3187 = vmatprep.subr.bf16.mxu0 %v4032_v22 }
 0x719   :  { %3189 = vmatpush1.bf16.msra.mxu0 %v4035_v41 }
 0x71a   :  { %3191 = vmatprep.subr.bf16.mxu0 %v4038_v44 }
 0x71d   :  { %3193 = vmatpush1.bf16.msra.mxu0 %v4041_v6 }
 0x71e   :  { %3195 = vmatprep.subr.bf16.mxu0 %v4044_v11 }
 0x721   :  { %3197 = vmatpush1.bf16.msra.mxu0 %v4047_v14 }
 0x722   :  { %3199 = vmatprep.subr.bf16.mxu0 %v4050_v20 }
 0x725   :  { %3201 = vmatpush1.bf16.msra.mxu0 %v4059_v60 }
 0x726   :  { %3227 = vmatprep.subr.bf16.mxu0 %v3957_v58 }
 0x7db   :  { %v936_v21 = vpop.f32.mrb[8].mxu0 }
 0x7dc   :  { %v940_v31 = vadd.f32 %v936_v21, %v3999_v3  ;;  %v2698_v37 = vpop.f32.mrb[9].mxu0  ;;  %v1154_v3 = vld [vmem:[#allocation5 + $0x20] sm:$0xff] }
 0x7dd   :  { %v4063_v24 = vpack.c.bf16 %v1155_v17, %v1154_v3  ;;  %v1168_v37 = vld [vmem:[#allocation5 + $0x250] sm:$0xff] }
 0x7de   :  { %941 = vst [vmem:[#allocation7 + $0x2] sm:$0x1] %v940_v31  ;;  %v942_v38 = vsel %vm3880_vm3, %v940_v31, 0.0 }
 0x7df   :  { %v944_v48 = vadd.f32 %v943_v36, %v942_v38  ;;  %v1169_v38 = vld [vmem:[#allocation5 + $0x278] sm:$0xff] }
 0x7e1   :  { %1042 = vmatmul.mubr.f32.vlgmr.msra.gmra.mrb[8].mxu1 %v944_v48  ;;  %v4108_v48 = vpack.c.bf16 %v1169_v38, %v1168_v37  ;;  %v1865_v38 = vld [vmem:[#allocation5 + $0x190] sm:$0xff] }
 0x7e2   :  { %2731 = vmatprep.mubr.msk.f32.mxu1 %vm3664_vm0, %v3662_v0  ;;  %3204 = vmatpush3.bf16.msra.mxu1 %v4063_v24 }
 0x7e3   :  { %3205 = vmatprep.subr.bf16.mxu1 %v3663_v54 }
 0x7e6   :  { %3207 = vmatpush3.bf16.msra.mxu1 %v4066_v49 }
 0x7e7   :  { %3208 = vmatprep.subr.bf16.mxu1 %v3663_v54 }
 0x7ea   :  { %3210 = vmatpush3.bf16.msra.mxu1 %v4070_v13 }
 0x7eb   :  { %3211 = vmatprep.subr.bf16.mxu1 %v3663_v54 }
 0x7ee   :  { %3213 = vmatpush3.bf16.msra.mxu1 %v4074_v33 }
 0x7ef   :  { %3214 = vmatprep.subr.bf16.mxu1 %v3663_v54 }
 0x7f2   :  { %3216 = vmatpush3.bf16.msra.mxu1 %v4078_v50 }
 0x7f3   :  { %3217 = vmatprep.subr.bf16.mxu1 %v3663_v54 }
 0x7f6   :  { %3219 = vmatpush3.bf16.msra.mxu1 %v4082_v4 }
 0x7f7   :  { %3220 = vmatprep.subr.bf16.mxu1 %v3663_v54 }
 0x7fa   :  { %3222 = vmatpush3.bf16.msra.mxu1 %v4086_v9 }
 0x7fb   :  { %3223 = vmatprep.subr.bf16.mxu1 %v3663_v54 }
 0x7fe   :  { %3225 = vmatpush3.bf16.msra.mxu1 %v4108_v48 }
 0x7ff   :  { %3259 = vmatprep.subr.bf16.mxu1 %v4009_v32 }
 0x8b4   :  { %v1043_v21 = vpop.f32.mrb[8].mxu1 }
 0x8b5   :  { %v1048_v31 = vmax.f32 %v1043_v21, 0.0  ;;  %v1045_v36 = vpop.f32.mrb[9].mxu1  ;;  %v1866_v21 = vld [vmem:[#allocation5 + $0x198] sm:$0xff] }
 0x8b7   :  { %1146 = vmatmul.mubr.f32.vlgmr.msra.gmra.mrb[10].mxu0 %v1048_v31  ;;  %v1868_v31 = vld [vmem:[#allocation5 + $0x1c0] sm:$0xff] }
 0x8b8   :  { %3229 = vmatpush1.bf16.msra.mxu0 %v3959_v10  ;;  %1341 = vmatprep.mubr.f32.mxu0 %v3662_v0  ;;  %v4231_v37 = vpack.c.bf16 %v1868_v31, %v1866_v21  ;;  %v1970_v21 = vld [vmem:[#allocation5 + $0x1a8] sm:$0xff]  ;;  %v1972_v31 = vld [vmem:[#allocation5 + $0x1d0] sm:$0xff] }
 0x8b9   :  { %3231 = vmatprep.subr.bf16.mxu0 %v3961_v12 }
 0x8bc   :  { %3233 = vmatpush1.bf16.msra.mxu0 %v3965_v30 }
 0x8bd   :  { %3235 = vmatprep.subr.bf16.mxu0 %v3968_v34 }
 0x8c0   :  { %3237 = vmatpush1.bf16.msra.mxu0 %v3971_v59 }
 0x8c1   :  { %3239 = vmatprep.subr.bf16.mxu0 %v3974_v1 }
 0x8c4   :  { %3241 = vmatpush1.bf16.msra.mxu0 %v3977_v26 }
 0x8c5   :  { %3243 = vmatprep.subr.bf16.mxu0 %v3980_v27 }
 0x8c8   :  { %3245 = vmatpush1.bf16.msra.mxu0 %v3983_v39 }
 0x8c9   :  { %3247 = vmatprep.subr.bf16.mxu0 %v3986_v40 }
 0x8cc   :  { %3249 = vmatpush1.bf16.msra.mxu0 %v3989_v52 }
 0x8cd   :  { %3251 = vmatprep.subr.bf16.mxu0 %v3992_v53 }
 0x8d0   :  { %3253 = vmatpush1.bf16.msra.mxu0 %v3995_v2 }
 0x8d1   :  { %3255 = vmatprep.subr.bf16.mxu0 %v4002_v8 }
 0x8d4   :  { %3257 = vmatpush1.bf16.msra.mxu0 %v4004_v15 }
 0x8d5   :  { %3290 = vmatprep.subr.bf16.mxu0 %v3663_v54 }
 0x98a   :  { %v1147_v51 = vpop.f32.mrb[10].mxu0 }
 0x98b   :  { %v1149_v57 = vpop.f32.mrb[11].mxu0 }
 0x98c   :  { %v1152_v3 = vadd.f32 %v1149_v57, %v1045_v36  ;;  %v1872_v57 = vld [vmem:[#allocation5 + $0x210] sm:$0xff] }
 0x98e   :  { %v1153_v17 = vmax.f32 %v1152_v3, 0.0 }
 0x990   :  { %2732 = vmatmul.mubr.f32.vlgmr.msra.gmra.mrb[10].mxu1 %v1153_v17 }
 0x991   :  { %3261 = vmatpush1.bf16.msra.mxu1 %v4011_v45  ;;  %1445 = vmatprep.mubr.f32.mxu1 %v3662_v0 }
 0x992   :  { %3263 = vmatprep.subr.bf16.mxu1 %v4013_v46 }
 0x995   :  { %3265 = vmatpush1.bf16.msra.mxu1 %v4017_v63 }
 0x996   :  { %3267 = vmatprep.subr.bf16.mxu1 %v4020_v7 }
 0x999   :  { %3269 = vmatpush1.bf16.msra.mxu1 %v4023_v42 }
 0x99a   :  { %3271 = vmatprep.subr.bf16.mxu1 %v4026_v43 }
 0x99d   :  { %3273 = vmatpush1.bf16.msra.mxu1 %v4029_v19 }
 0x99e   :  { %3275 = vmatprep.subr.bf16.mxu1 %v4032_v22 }
 0x9a1   :  { %3277 = vmatpush1.bf16.msra.mxu1 %v4035_v41 }
 0x9a2   :  { %3279 = vmatprep.subr.bf16.mxu1 %v4038_v44 }
 0x9a5   :  { %3281 = vmatpush1.bf16.msra.mxu1 %v4041_v6 }
 0x9a6   :  { %3283 = vmatprep.subr.bf16.mxu1 %v4044_v11 }
 0x9a9   :  { %3285 = vmatpush1.bf16.msra.mxu1 %v4047_v14 }
 0x9aa   :  { %3287 = vmatprep.subr.bf16.mxu1 %v4050_v20 }
 0x9ad   :  { %3289 = vmatpush1.bf16.msra.mxu1 %v4059_v60 }
 0x9ae   :  { %3315 = vmatprep.subr.bf16.mxu1 %v3957_v58 }
 0xa63   :  { %v1236_v23 = vpop.f32.mrb[10].mxu1 }
 0xa64   :  { %v1240_v25 = vadd.f32 %v1236_v23, %v1147_v51  ;;  %v2733_v5 = vpop.f32.mrb[11].mxu1  ;;  %v1870_v51 = vld [vmem:[#allocation5 + $0x1e8] sm:$0xff]  ;;  %v1869_v23 = vld [vmem:[#allocation5 + $0x1e0] sm:$0xff] }
 0xa65   :  { %v4237_v17 = vpack.c.bf16 %v1872_v57, %v1870_v51  ;;  %v1969_v51 = vld [vmem:[#allocation5 + $0x1a0] sm:$0xff]  ;;  %v1971_v57 = vld [vmem:[#allocation5 + $0x1c8] sm:$0xff] }
 0xa66   :  { %1241 = vst [vmem:[#allocation7 + $0x3] sm:$0x1] %v1240_v25  ;;  %v1242_v28 = vsel %vm3880_vm3, %v1240_v25, 0.0  ;;  %v1871_v25 = vld [vmem:[#allocation5 + $0x208] sm:$0xff] }
 0xa67   :  { %v1244_v29 = vadd.f32 %v1243_v55, %v1242_v28  ;;  %v4240_v55 = vpack.c.bf16 %v1871_v25, %v1869_v23  ;;  %v1974_v23 = vld [vmem:[#allocation5 + $0x1f8] sm:$0xff]  ;;  %v1976_v25 = vld [vmem:[#allocation5 + $0x220] sm:$0xff] }
 0xa69   :  { %1342 = vmatmul.mubr.f32.vlgmr.msra.gmra.mrb[12].mxu0 %v1244_v29 }
 0xa6a   :  { %3292 = vmatpush3.bf16.msra.mxu0 %v4063_v24  ;;  %2766 = vmatprep.mubr.msk.f32.mxu0 %vm3664_vm0, %v3662_v0 }
 0xa6b   :  { %3293 = vmatprep.subr.bf16.mxu0 %v3663_v54 }
 0xa6e   :  { %3295 = vmatpush3.bf16.msra.mxu0 %v4066_v49 }
 0xa6f   :  { %3296 = vmatprep.subr.bf16.mxu0 %v3663_v54 }
 0xa72   :  { %3298 = vmatpush3.bf16.msra.mxu0 %v4070_v13 }
 0xa73   :  { %3299 = vmatprep.subr.bf16.mxu0 %v3663_v54 }
 0xa76   :  { %3301 = vmatpush3.bf16.msra.mxu0 %v4074_v33 }
 0xa77   :  { %3302 = vmatprep.subr.bf16.mxu0 %v3663_v54 }
 0xa7a   :  { %3304 = vmatpush3.bf16.msra.mxu0 %v4078_v50 }
 0xa7b   :  { %3305 = vmatprep.subr.bf16.mxu0 %v3663_v54 }
 0xa7e   :  { %3307 = vmatpush3.bf16.msra.mxu0 %v4082_v4 }
 0xa7f   :  { %3308 = vmatprep.subr.bf16.mxu0 %v3663_v54 }
 0xa82   :  { %3310 = vmatpush3.bf16.msra.mxu0 %v4086_v9 }
 0xa83   :  { %3311 = vmatprep.subr.bf16.mxu0 %v3663_v54 }
 0xa86   :  { %3313 = vmatpush3.bf16.msra.mxu0 %v4108_v48 }
 0xa87   :  { %3347 = vmatprep.subr.bf16.mxu0 %v4009_v32  ;;  %v1845_v32 = vld [vmem:[#allocation5] sm:$0xff] }
 0xb3c   :  { %v1343_v58 = vpop.f32.mrb[12].mxu0 }
 0xb3d   :  { %v1348_v35 = vmax.f32 %v1343_v58, 0.0  ;;  %v1345_v47 = vpop.f32.mrb[13].mxu0 }
 0xb3f   :  { %1446 = vmatmul.mubr.f32.vlgmr.msra.gmra.mrb[12].mxu1 %v1348_v35  ;;  %v1874_v35 = vld [vmem:[#allocation5 + $0x238] sm:$0xff] }
 0xb40   :  { %3317 = vmatpush1.bf16.msra.mxu1 %v3959_v10  ;;  %1641 = vmatprep.mubr.f32.mxu1 %v3662_v0 }
 0xb41   :  { %3319 = vmatprep.subr.bf16.mxu1 %v3961_v12 }
 0xb44   :  { %3321 = vmatpush1.bf16.msra.mxu1 %v3965_v30 }
 0xb45   :  { %3323 = vmatprep.subr.bf16.mxu1 %v3968_v34 }
 0xb48   :  { %3325 = vmatpush1.bf16.msra.mxu1 %v3971_v59 }
 0xb49   :  { %3327 = vmatprep.subr.bf16.mxu1 %v3974_v1 }
 0xb4c   :  { %3329 = vmatpush1.bf16.msra.mxu1 %v3977_v26  ;;  %v1543_v26 = vld [vmem:[#allocation2 + $0x5] sm:$0x1] }
 0xb4d   :  { %3331 = vmatprep.subr.bf16.mxu1 %v3980_v27 }
 0xb50   :  { %3333 = vmatpush1.bf16.msra.mxu1 %v3983_v39 }
 0xb51   :  { %3335 = vmatprep.subr.bf16.mxu1 %v3986_v40 }
 0xb54   :  { %3337 = vmatpush1.bf16.msra.mxu1 %v3989_v52 }
 0xb55   :  { %3339 = vmatprep.subr.bf16.mxu1 %v3992_v53 }
 0xb58   :  { %3341 = vmatpush1.bf16.msra.mxu1 %v3995_v2 }
 0xb59   :  { %3343 = vmatprep.subr.bf16.mxu1 %v4002_v8  ;;  %v1846_v8 = vld [vmem:[#allocation5 + $0x8] sm:$0xff] }
 0xb5c   :  { %3345 = vmatpush1.bf16.msra.mxu1 %v4004_v15  ;;  %v1848_v15 = vld [vmem:[#allocation5 + $0x30] sm:$0xff] }
 0xb5d   :  { %3378 = vmatprep.subr.bf16.mxu1 %v3663_v54 }
 0xc12   :  { %v1447_v10 = vpop.f32.mrb[12].mxu1 }
 0xc13   :  { %v1449_v12 = vpop.f32.mrb[13].mxu1 }
 0xc14   :  { %v1452_v30 = vadd.f32 %v1449_v12, %v1345_v47  ;;  %v1876_v47 = vld [vmem:[#allocation5 + $0x260] sm:$0xff]  ;;  %v1873_v12 = vld [vmem:[#allocation5 + $0x230] sm:$0xff] }
 0xc16   :  { %v1453_v34 = vmax.f32 %v1452_v30, 0.0  ;;  %v1875_v30 = vld [vmem:[#allocation5 + $0x258] sm:$0xff] }
 0xc18   :  { %2767 = vmatmul.mubr.f32.vlgmr.msra.gmra.mrb[14].mxu0 %v1453_v34  ;;  %v4249_v34 = vpack.c.bf16 %v1875_v30, %v1873_v12  ;;  %v1980_v12 = vld [vmem:[#allocation5 + $0x270] sm:$0xff] }
 0xc19   :  { %3349 = vmatpush1.bf16.msra.mxu0 %v4011_v45  ;;  %1745 = vmatprep.mubr.f32.mxu0 %v3662_v0  ;;  %v4202_v45 = vpack.c.bf16 %v1848_v15, %v1846_v8  ;;  %v1953_v8 = vld [vmem:[#allocation5 + $0x60] sm:$0xff]  ;;  %v1955_v15 = vld [vmem:[#allocation5 + $0x88] sm:$0xff] }
 0xc1a   :  { %3351 = vmatprep.subr.bf16.mxu0 %v4013_v46  ;;  %v1847_v46 = vld [vmem:[#allocation5 + $0x28] sm:$0xff] }
 0xc1d   :  { %3353 = vmatpush1.bf16.msra.mxu0 %v4017_v63  ;;  %v1850_v63 = vld [vmem:[#allocation5 + $0x58] sm:$0xff] }
 0xc1e   :  { %3355 = vmatprep.subr.bf16.mxu0 %v4020_v7  ;;  %v1852_v7 = vld [vmem:[#allocation5 + $0x80] sm:$0xff] }
 0xc21   :  { %3357 = vmatpush1.bf16.msra.mxu0 %v4023_v42  ;;  %v4204_v42 = vpack.c.bf16 %v1847_v46, %v1845_v32  ;;  %v1958_v32 = vld [vmem:[#allocation5 + $0xb8] sm:$0xff]  ;;  %v1960_v46 = vld [vmem:[#allocation5 + $0xe0] sm:$0xff] }
 0xc22   :  { %3359 = vmatprep.subr.bf16.mxu0 %v4026_v43  ;;  %v4206_v43 = vpack.c.bf16 %v1852_v7, %v1850_v63  ;;  %v4262_v63 = vpack.c.bf16 %v1955_v15, %v1953_v8  ;;  %v4265_v7 = vpack.c.bf16 %v1960_v46, %v1958_v32  ;;  %v1977_v15 = vld [vmem:[#allocation5 + $0x240] sm:$0xff]  ;;  %v1979_v32 = vld [vmem:[#allocation5 + $0x268] sm:$0xff] }
 0xc23   :  { %v4304_v46 = vpack.c.bf16 %v1979_v32, %v1977_v15 }
 0xc25   :  { %3361 = vmatpush1.bf16.msra.mxu0 %v4029_v19  ;;  %v1849_v19 = vld [vmem:[#allocation5 + $0x50] sm:$0xff] }
 0xc26   :  { %3363 = vmatprep.subr.bf16.mxu0 %v4032_v22  ;;  %v1851_v22 = vld [vmem:[#allocation5 + $0x78] sm:$0xff] }
 0xc29   :  { %3365 = vmatpush1.bf16.msra.mxu0 %v4035_v41  ;;  %v1854_v41 = vld [vmem:[#allocation5 + $0xa8] sm:$0xff] }
 0xc2a   :  { %3367 = vmatprep.subr.bf16.mxu0 %v4038_v44  ;;  %v1856_v44 = vld [vmem:[#allocation5 + $0xd0] sm:$0xff] }
 0xc2d   :  { %3369 = vmatpush1.bf16.msra.mxu0 %v4041_v6  ;;  %v4210_v6 = vpack.c.bf16 %v1851_v22, %v1849_v19  ;;  %v1957_v19 = vld [vmem:[#allocation5 + $0xb0] sm:$0xff]  ;;  %v1959_v22 = vld [vmem:[#allocation5 + $0xd8] sm:$0xff] }
 0xc2e   :  { %3371 = vmatprep.subr.bf16.mxu0 %v4044_v11  ;;  %v4213_v11 = vpack.c.bf16 %v1856_v44, %v1854_v41  ;;  %v1962_v41 = vld [vmem:[#allocation5 + $0x108] sm:$0xff]  ;;  %v1964_v44 = vld [vmem:[#allocation5 + $0x130] sm:$0xff] }
 0xc31   :  { %3373 = vmatpush1.bf16.msra.mxu0 %v4047_v14  ;;  %v1853_v14 = vld [vmem:[#allocation5 + $0xa0] sm:$0xff] }
 0xc32   :  { %3375 = vmatprep.subr.bf16.mxu0 %v4050_v20  ;;  %v1855_v20 = vld [vmem:[#allocation5 + $0xc8] sm:$0xff] }
 0xc35   :  { %3377 = vmatpush1.bf16.msra.mxu0 %v4059_v60  ;;  %v1858_v60 = vld [vmem:[#allocation5 + $0xf8] sm:$0xff] }
 0xc36   :  { %3403 = vmatprep.subr.bf16.mxu0 %v4202_v45 }
 0xceb   :  { %v1536_v59 = vpop.f32.mrb[14].mxu0 }
 0xcec   :  { %v1540_v1 = vadd.f32 %v1536_v59, %v1447_v10  ;;  %v2768_v27 = vpop.f32.mrb[15].mxu0  ;;  %v4247_v10 = vpack.c.bf16 %v1876_v47, %v1874_v35  ;;  %v1950_v59 = vld [vmem:[#allocation5 + $0x18] sm:$0xff]  ;;  %v1978_v47 = vld [vmem:[#allocation5 + $0x248] sm:$0xff] }
 0xced   :  { %v1975_v35 = vld [vmem:[#allocation5 + $0x218] sm:$0xff] }
 0xcee   :  { %1541 = vst [vmem:[#allocation7 + $0x4] sm:$0x1] %v1540_v1  ;;  %v1542_v39 = vsel %vm3880_vm3, %v1540_v1, 0.0  ;;  %v1952_v1 = vld [vmem:[#allocation5 + $0x40] sm:$0xff] }
 0xcef   :  { %v1544_v40 = vadd.f32 %v1543_v26, %v1542_v39  ;;  %v1949_v26 = vld [vmem:[#allocation5 + $0x10] sm:$0xff]  ;;  %v4254_v27 = vpack.c.bf16 %v1952_v1, %v1950_v59  ;;  %v1951_v39 = vld [vmem:[#allocation5 + $0x38] sm:$0xff]  ;;  %v4295_v59 = vpack.c.bf16 %v1980_v12, %v1978_v47 }
 0xcf1   :  { %1642 = vmatmul.mubr.f32.vlgmr.msra.gmra.mrb[14].mxu1 %v1544_v40  ;;  %v1954_v40 = vld [vmem:[#allocation5 + $0x68] sm:$0xff] }
 0xcf2   :  { %3380 = vmatpush3.bf16.msra.mxu1 %v4063_v24  ;;  %2801 = vmatprep.mubr.msk.f32.mxu1 %vm3664_vm0, %v3662_v0  ;;  %v1860_v24 = vld [vmem:[#allocation5 + $0x120] sm:$0xff] }
 0xcf3   :  { %3381 = vmatprep.subr.bf16.mxu1 %v3663_v54 }
 0xcf6   :  { %3383 = vmatpush3.bf16.msra.mxu1 %v4066_v49  ;;  %v4216_v49 = vpack.c.bf16 %v1855_v20, %v1853_v14  ;;  %v4268_v14 = vpack.c.bf16 %v1959_v22, %v1957_v19  ;;  %v4271_v20 = vpack.c.bf16 %v1964_v44, %v1962_v41  ;;  %v2055_v19 = vld [vmem:[#allocation5 + $0x48] sm:$0xff]  ;;  %v2056_v22 = vld [vmem:[#allocation5 + $0x70] sm:$0xff]  ;;  %v2057_v44 = vld [vmem:[#allocation5 + $0x98] sm:$0xff] }
 0xcf7   :  { %3384 = vmatprep.subr.bf16.mxu1 %v3663_v54 }
 0xcfa   :  { %3386 = vmatpush3.bf16.msra.mxu1 %v4070_v13  ;;  %v4219_v13 = vpack.c.bf16 %v1860_v24, %v1858_v60  ;;  %v1961_v60 = vld [vmem:[#allocation5 + $0x100] sm:$0xff]  ;;  %v1963_v24 = vld [vmem:[#allocation5 + $0x128] sm:$0xff] }
 0xcfb   :  { %3387 = vmatprep.subr.bf16.mxu1 %v3663_v54  ;;  %v4274_v61 = vpack.c.bf16 %v1963_v24, %v1961_v60  ;;  %v4311_v60 = vpack.c.bf16 %v2057_v44, %v2056_v22  ;;  %v2058_v24 = vld [vmem:[#allocation5 + $0xc0] sm:$0xff] }
 0xcfe   :  { %3389 = vmatpush3.bf16.msra.mxu1 %v4074_v33  ;;  %v1857_v33 = vld [vmem:[#allocation5 + $0xf0] sm:$0xff] }
 0xcff   :  { %3390 = vmatprep.subr.bf16.mxu1 %v3663_v54 }
 0xd02   :  { %3392 = vmatpush3.bf16.msra.mxu1 %v4078_v50  ;;  %v1859_v50 = vld [vmem:[#allocation5 + $0x118] sm:$0xff] }
 0xd03   :  { %3393 = vmatprep.subr.bf16.mxu1 %v3663_v54 }
 0xd06   :  { %3395 = vmatpush3.bf16.msra.mxu1 %v4082_v4  ;;  %v4222_v4 = vpack.c.bf16 %v1859_v50, %v1857_v33  ;;  %v1966_v33 = vld [vmem:[#allocation5 + $0x158] sm:$0xff]  ;;  %v1968_v50 = vld [vmem:[#allocation5 + $0x180] sm:$0xff] }
 0xd07   :  { %3396 = vmatprep.subr.bf16.mxu1 %v3663_v54  ;;  %v4277_v62 = vpack.c.bf16 %v1968_v50, %v1966_v33  ;;  %v2059_v33 = vld [vmem:[#allocation5 + $0xe8] sm:$0xff] }
 0xd08   :  { %v4315_v50 = vpack.c.bf16 %v2059_v33, %v2058_v24 }
 0xd0a   :  { %3398 = vmatpush3.bf16.msra.mxu1 %v4086_v9  ;;  %v1863_v9 = vld [vmem:[#allocation5 + $0x168] sm:$0xff] }
 0xd0b   :  { %3399 = vmatprep.subr.bf16.mxu1 %v3663_v54  ;;  %v4228_v36 = vpack.c.bf16 %v1863_v9, %v1861_v18  ;;  %v1965_v18 = vld [vmem:[#allocation5 + $0x150] sm:$0xff]  ;;  %v1967_v9 = vld [vmem:[#allocation5 + $0x178] sm:$0xff] }
 0xd0e   :  { %3401 = vmatpush3.bf16.msra.mxu1 %v4108_v48  ;;  %v1867_v48 = vld [vmem:[#allocation5 + $0x1b8] sm:$0xff] }
 0xd0f   :  { %v4234_v3 = vpack.c.bf16 %v1867_v48, %v1865_v38  ;;  %3435 = vmatprep.subr.bf16.mxu1 %v4254_v27  ;;  %v4280_v38 = vpack.c.bf16 %v1967_v9, %v1965_v18  ;;  %v4283_v48 = vpack.c.bf16 %v1972_v31, %v1970_v21  ;;  %v2061_v18 = vld [vmem:[#allocation5 + $0x138] sm:$0xff]  ;;  %v2062_v21 = vld [vmem:[#allocation5 + $0x160] sm:$0xff]  ;;  %v2063_v31 = vld [vmem:[#allocation5 + $0x188] sm:$0xff] }
 0xdc4   :  { %v1643_v52 = vpop.f32.mrb[14].mxu1 }
 0xdc5   :  { %v1648_v53 = vmax.f32 %v1643_v52, 0.0  ;;  %v1645_v2 = vpop.f32.mrb[15].mxu1  ;;  %v1956_v52 = vld [vmem:[#allocation5 + $0x90] sm:$0xff] }
 0xdc7   :  { %1746 = vmatmul.mubr.f32.vlgmr.msra.gmra.mrb[16].mxu0 %v1648_v53  ;;  %v4256_v53 = vpack.c.bf16 %v1951_v39, %v1949_v26  ;;  %v1843_v39 = vld [vmem:[#allocation2 + $0x6] sm:$0x1] }
 0xdc8   :  { %1941 = vmatprep.mubr.f32.mxu0 %v3662_v0  ;;  %3405 = vmatpush1.bf16.msra.mxu0 %v4204_v42 }
 0xdc9   :  { %3407 = vmatprep.subr.bf16.mxu0 %v4206_v43 }
 0xdcc   :  { %3409 = vmatpush1.bf16.msra.mxu0 %v4210_v6 }
 0xdcd   :  { %3411 = vmatprep.subr.bf16.mxu0 %v4213_v11 }
 0xdd0   :  { %3413 = vmatpush1.bf16.msra.mxu0 %v4216_v49 }
 0xdd1   :  { %3415 = vmatprep.subr.bf16.mxu0 %v4219_v13 }
 0xdd4   :  { %3417 = vmatpush1.bf16.msra.mxu0 %v4222_v4 }
 0xdd5   :  { %3419 = vmatprep.subr.bf16.mxu0 %v4225_v16 }
 0xdd8   :  { %3421 = vmatpush1.bf16.msra.mxu0 %v4228_v36 }
 0xdd9   :  { %3423 = vmatprep.subr.bf16.mxu0 %v4231_v37 }
 0xddc   :  { %3425 = vmatpush1.bf16.msra.mxu0 %v4234_v3 }
 0xddd   :  { %3427 = vmatprep.subr.bf16.mxu0 %v4237_v17 }
 0xde0   :  { %3429 = vmatpush1.bf16.msra.mxu0 %v4240_v55 }
 0xde1   :  { %3431 = vmatprep.subr.bf16.mxu0 %v4247_v10 }
 0xde4   :  { %3433 = vmatpush1.bf16.msra.mxu0 %v4249_v34 }
 0xde5   :  { %3466 = vmatprep.subr.bf16.mxu0 %v3663_v54 }
 0xe9a   :  { %v4244_v5 = vpop.f32.mrb[16].mxu0 }
 0xe9b   :  { %v1749_v28 = vpop.f32.mrb[17].mxu0 }
 0xe9c   :  { %v1752_v29 = vadd.f32 %v1749_v28, %v1645_v2  ;;  %v4258_v2 = vpack.c.bf16 %v1956_v52, %v1954_v40  ;;  %v4286_v28 = vpack.c.bf16 %v1971_v57, %v1969_v51  ;;  %v4323_v51 = vpack.c.bf16 %v2063_v31, %v2062_v21  ;;  %v2064_v57 = vld [vmem:[#allocation5 + $0x1b0] sm:$0xff] }
 0xe9e   :  { %v1753_v58 = vmax.f32 %v1752_v29, 0.0  ;;  %v4289_v29 = vpack.c.bf16 %v1976_v25, %v1974_v23  ;;  %v2065_v23 = vld [vmem:[#allocation5 + $0x1d8] sm:$0xff] }
 0xe9f   :  { %v4327_v25 = vpack.c.bf16 %v2065_v23, %v2064_v57 }
 0xea0   :  { %2802 = vmatmul.mubr.f32.vlgmr.msra.gmra.mrb[16].mxu1 %v1753_v58  ;;  %v1973_v58 = vld [vmem:[#allocation5 + $0x1f0] sm:$0xff] }
 0xea1   :  { %2045 = vmatprep.mubr.f32.mxu1 %v3662_v0  ;;  %3437 = vmatpush1.bf16.msra.mxu1 %v4256_v53  ;;  %v4292_v30 = vpack.c.bf16 %v1975_v35, %v1973_v58  ;;  %v2066_v58 = vld [vmem:[#allocation5 + $0x200] sm:$0xff]  ;;  %v2067_v35 = vld [vmem:[#allocation5 + $0x228] sm:$0xff] }
 0xea2   :  { %3439 = vmatprep.subr.bf16.mxu1 %v4258_v2  ;;  %v4331_v47 = vpack.c.bf16 %v2067_v35, %v2066_v58 }
 0xea5   :  { %3441 = vmatpush1.bf16.msra.mxu1 %v4262_v63 }
 0xea6   :  { %3443 = vmatprep.subr.bf16.mxu1 %v4265_v7 }
 0xea9   :  { %3445 = vmatpush1.bf16.msra.mxu1 %v4268_v14 }
 0xeaa   :  { %3447 = vmatprep.subr.bf16.mxu1 %v4271_v20 }
 0xead   :  { %3449 = vmatpush1.bf16.msra.mxu1 %v4274_v61 }
 0xeae   :  { %3451 = vmatprep.subr.bf16.mxu1 %v4277_v62 }
 0xeb1   :  { %3453 = vmatpush1.bf16.msra.mxu1 %v4280_v38 }
 0xeb2   :  { %3455 = vmatprep.subr.bf16.mxu1 %v4283_v48 }
 0xeb5   :  { %3457 = vmatpush1.bf16.msra.mxu1 %v4286_v28 }
 0xeb6   :  { %3459 = vmatprep.subr.bf16.mxu1 %v4289_v29 }
 0xeb9   :  { %3461 = vmatpush1.bf16.msra.mxu1 %v4292_v30 }
 0xeba   :  { %3463 = vmatprep.subr.bf16.mxu1 %v4295_v59 }
 0xebd   :  { %3465 = vmatpush1.bf16.msra.mxu1 %v4304_v46 }
 0xebe   :  { %3491 = vmatprep.subr.bf16.mxu1 %v4202_v45  ;;  %v2060_v45 = vld [vmem:[#allocation5 + $0x110] sm:$0xff] }
 0xebf   :  { %v4319_v9 = vpack.c.bf16 %v2061_v18, %v2060_v45 }
 0xf73   :  { %v1836_v1 = vpop.f32.mrb[16].mxu1 }
 0xf74   :  { %v1840_v26 = vadd.f32 %v1836_v1, %v4244_v5  ;;  %v2803_v40 = vpop.f32.mrb[17].mxu1  ;;  %v2054_v5 = vld [vmem:[#allocation5 + $0x20] sm:$0xff] }
 0xf75   :  { %v4308_v41 = vpack.c.bf16 %v2055_v19, %v2054_v5 }
 0xf76   :  { %1841 = vst [vmem:[#allocation7 + $0x5] sm:$0x1] %v1840_v26  ;;  %v1842_v52 = vsel %vm3880_vm3, %v1840_v26, 0.0 }
 0xf77   :  { %v1844_v8 = vadd.f32 %v1843_v39, %v1842_v52 }
 0xf79   :  { %1942 = vmatmul.mubr.f32.vlgmr.msra.gmra.mrb[18].mxu0 %v1844_v8 }
 0xf7a   :  { %2836 = vmatprep.mubr.msk.f32.mxu0 %vm3664_vm0, %v3662_v0  ;;  %3468 = vmatpush3.bf16.msra.mxu0 %v4308_v41 }
 0xf7b   :  { %3469 = vmatprep.subr.bf16.mxu0 %v3663_v54 }
 0xf7e   :  { %3471 = vmatpush3.bf16.msra.mxu0 %v4311_v60 }
 0xf7f   :  { %3472 = vmatprep.subr.bf16.mxu0 %v3663_v54 }
 0xf82   :  { %3474 = vmatpush3.bf16.msra.mxu0 %v4315_v50 }
 0xf83   :  { %3475 = vmatprep.subr.bf16.mxu0 %v3663_v54 }
 0xf86   :  { %3477 = vmatpush3.bf16.msra.mxu0 %v4319_v9 }
 0xf87   :  { %3478 = vmatprep.subr.bf16.mxu0 %v3663_v54 }
 0xf8a   :  { %3480 = vmatpush3.bf16.msra.mxu0 %v4323_v51 }
 0xf8b   :  { %3481 = vmatprep.subr.bf16.mxu0 %v3663_v54 }
 0xf8e   :  { %3483 = vmatpush3.bf16.msra.mxu0 %v4327_v25 }
 0xf8f   :  { %3484 = vmatprep.subr.bf16.mxu0 %v3663_v54 }
 0xf92   :  { %3486 = vmatpush3.bf16.msra.mxu0 %v4331_v47 }
 0xf93   :  { %3487 = vmatprep.subr.bf16.mxu0 %v3663_v54 }
0x104c   :  { %v1943_v12 = vpop.f32.mrb[18].mxu0 }
0x104d   :  { %v1948_v1 = vmax.f32 %v1943_v12, 0.0  ;;  %v1945_v26 = vpop.f32.mrb[19].mxu0 }
0x104f   :  { %2046 = vmatmul.mubr.f32.vlgmr.msra.gmra.mrb[18].mxu1 %v1948_v1 }
0x1050   :  { %3493 = vmatpush1.bf16.msra.mxu1 %v4204_v42  ;;  %2241 = vmatprep.mubr.f32.mxu1 %v3662_v0  ;;  %v2068_v42 = vld [vmem:[#allocation5 + $0x250] sm:$0xff] }
0x1051   :  { %3495 = vmatprep.subr.bf16.mxu1 %v4206_v43  ;;  %v2069_v43 = vld [vmem:[#allocation5 + $0x278] sm:$0xff] }
0x1054   :  { %3497 = vmatpush1.bf16.msra.mxu1 %v4210_v6  ;;  %v3488_v6 = vpack.c.bf16 %v2069_v43, %v2068_v42 }
0x1055   :  { %3499 = vmatprep.subr.bf16.mxu1 %v4213_v11 }
0x1056   :  { %3489 = vmatpush3.bf16.msra.mxu0 %v3488_v6 }
0x1057   :  { %3523 = vmatprep.subr.bf16.mxu0 %v4254_v27 }
0x1058   :  { %3501 = vmatpush1.bf16.msra.mxu1 %v4216_v49 }
0x1059   :  { %3503 = vmatprep.subr.bf16.mxu1 %v4219_v13 }
0x105c   :  { %3505 = vmatpush1.bf16.msra.mxu1 %v4222_v4 }
0x105d   :  { %3507 = vmatprep.subr.bf16.mxu1 %v4225_v16 }
0x1060   :  { %3509 = vmatpush1.bf16.msra.mxu1 %v4228_v36 }
0x1061   :  { %3511 = vmatprep.subr.bf16.mxu1 %v4231_v37  ;;  %v2143_v37 = vld [vmem:[#allocation2 + $0x7] sm:$0x1] }
0x1064   :  { %3513 = vmatpush1.bf16.msra.mxu1 %v4234_v3 }
0x1065   :  { %3515 = vmatprep.subr.bf16.mxu1 %v4237_v17 }
0x1068   :  { %3517 = vmatpush1.bf16.msra.mxu1 %v4240_v55 }
0x1069   :  { %3519 = vmatprep.subr.bf16.mxu1 %v4247_v10 }
0x106c   :  { %3521 = vmatpush1.bf16.msra.mxu1 %v4249_v34 }
0x106d   :  { %3554 = vmatprep.subr.bf16.mxu1 %v3663_v54 }
0x1122   :  { %v2047_v11 = vpop.f32.mrb[18].mxu1 }
0x1123   :  { %v2049_v49 = vpop.f32.mrb[19].mxu1 }
0x1124   :  { %v2052_v13 = vadd.f32 %v2049_v49, %v1945_v26 }
0x1126   :  { %v2053_v4 = vmax.f32 %v2052_v13, 0.0 }
0x1128   :  { %2837 = vmatmul.mubr.f32.vlgmr.msra.gmra.mrb[20].mxu0 %v2053_v4 }
0x1129   :  { %3525 = vmatpush1.bf16.msra.mxu0 %v4256_v53  ;;  %2345 = vmatprep.mubr.f32.mxu0 %v3662_v0 }
0x112a   :  { %3527 = vmatprep.subr.bf16.mxu0 %v4258_v2 }
0x112d   :  { %3529 = vmatpush1.bf16.msra.mxu0 %v4262_v63 }
0x112e   :  { %3531 = vmatprep.subr.bf16.mxu0 %v4265_v7 }
0x1131   :  { %3533 = vmatpush1.bf16.msra.mxu0 %v4268_v14 }
0x1132   :  { %3535 = vmatprep.subr.bf16.mxu0 %v4271_v20 }
0x1135   :  { %3537 = vmatpush1.bf16.msra.mxu0 %v4274_v61 }
0x1136   :  { %3539 = vmatprep.subr.bf16.mxu0 %v4277_v62 }
0x1139   :  { %3541 = vmatpush1.bf16.msra.mxu0 %v4280_v38 }
0x113a   :  { %3543 = vmatprep.subr.bf16.mxu0 %v4283_v48 }
0x113d   :  { %3545 = vmatpush1.bf16.msra.mxu0 %v4286_v28 }
0x113e   :  { %3547 = vmatprep.subr.bf16.mxu0 %v4289_v29 }
0x1141   :  { %3549 = vmatpush1.bf16.msra.mxu0 %v4292_v30 }
0x1142   :  { %3551 = vmatprep.subr.bf16.mxu0 %v4295_v59 }
0x1145   :  { %3553 = vmatpush1.bf16.msra.mxu0 %v4304_v46 }
0x11fb   :  { %v2136_v16 = vpop.f32.mrb[20].mxu0 }
0x11fc   :  { %v2140_v36 = vadd.f32 %v2136_v16, %v2047_v11  ;;  %v2838_v3 = vpop.f32.mrb[21].mxu0 }
0x11fe   :  { %2141 = vst [vmem:[#allocation7 + $0x6] sm:$0x1] %v2140_v36  ;;  %v2142_v17 = vsel %vm3880_vm3, %v2140_v36, 0.0 }
0x11ff   :  { %v2144_v55 = vadd.f32 %v2143_v37, %v2142_v17 }
0x1201   :  { %2242 = vmatmul.mubr.f32.vlgmr.msra.gmra.mrb[20].mxu1 %v2144_v55 }
0x1202   :  { %3556 = vmatpush3.bf16.msra.mxu1 %v4308_v41  ;;  %2871 = vmatprep.mubr.msk.f32.mxu1 %vm3664_vm0, %v3662_v0 }
0x1203   :  { %3557 = vmatprep.subr.bf16.mxu1 %v3663_v54 }
0x1206   :  { %3559 = vmatpush3.bf16.msra.mxu1 %v4311_v60 }
0x1207   :  { %3560 = vmatprep.subr.bf16.mxu1 %v3663_v54 }
0x120a   :  { %3562 = vmatpush3.bf16.msra.mxu1 %v4315_v50 }
0x120b   :  { %3563 = vmatprep.subr.bf16.mxu1 %v3663_v54 }
0x120e   :  { %3565 = vmatpush3.bf16.msra.mxu1 %v4319_v9 }
0x120f   :  { %3566 = vmatprep.subr.bf16.mxu1 %v3663_v54 }
0x1212   :  { %3568 = vmatpush3.bf16.msra.mxu1 %v4323_v51 }
0x1213   :  { %3569 = vmatprep.subr.bf16.mxu1 %v3663_v54 }
0x1216   :  { %3571 = vmatpush3.bf16.msra.mxu1 %v4327_v25 }
0x1217   :  { %3572 = vmatprep.subr.bf16.mxu1 %v3663_v54 }
0x121a   :  { %3574 = vmatpush3.bf16.msra.mxu1 %v4331_v47 }
0x121b   :  { %3575 = vmatprep.subr.bf16.mxu1 %v3663_v54 }
0x121e   :  { %3577 = vmatpush3.bf16.msra.mxu1 %v3488_v6 }
0x12d4   :  { %v2243_v0 = vpop.f32.mrb[20].mxu1 }
0x12d5   :  { %v2248_v56 = vmax.f32 %v2243_v0, 0.0  ;;  %v2245_v10 = vpop.f32.mrb[21].mxu1 }
0x12d7   :  { %2346 = vmatmul.mubr.f32.vlgmr.msra.gmra.mrb[22].mxu0 %v2248_v56 }
0x13aa   :  { %v2347_v34 = vpop.f32.mrb[22].mxu0 }
0x13ab   :  { %v2349_v27 = vpop.f32.mrb[23].mxu0 }
0x13ac   :  { %v2352_v53 = vadd.f32 %v2349_v27, %v2245_v10 }
0x13ae   :  { %v2353_v2 = vmax.f32 %v2352_v53, 0.0 }
0x13b0   :  { %2872 = vmatmul.mubr.f32.vlgmr.msra.gmra.mrb[22].mxu1 %v2353_v2 }
0x1483   :  { %v2436_v63 = vpop.f32.mrb[22].mxu1 }
0x1484   :  { %v2440_v7 = vadd.f32 %v2436_v63, %v2347_v34  ;;  %v2873_v14 = vpop.f32.mrb[23].mxu1 }
0x1486   :  { %2441 = vst [vmem:[#allocation7 + $0x7] sm:$0x1] %v2440_v7 }
0x1487   :  { %3641 = shalt.err (!%p3638_p6)
}
0x1488   :  { %s3642_s10 = scalar_lea.hbm %s4402_s2, 128 }
0x1489   :  { %p3643_p7 = scmp.ne.s32.totalorder %s4402_s2, %s3642_s10  ;;  %p3646_p8 = scmp.lt.u32.totalorder %s3642_s10, %s4402_s2 }
0x148b   :  { %p3648_p9 = pnand %p3646_p8, %p3643_p7 }
0x148d   :  { %3651 = shalt.err (!%p3648_p9)
}
0x148e   :  { %2451 = dma.vmem_to_hbm [thread:$0]  %s2449_s6, 128, %s4402_s2, [#allocation4]  }
0x148f   :  { %3656 = dma.done.wait [#allocation4], 128  }
0x1490   :  { %3657 = vsyncadd [#allocation4], 4294967168 }
0x1491   :  { %2455 = vsyncpa [#allocation3], 1 }
0x1492   :  { %2456 = vsyncpa [#allocation6], 1 }
0x1493   :  { %2457 = vsyncpa [#allocation4], 1 }

</bundles_post_ra>
